<compile_context>
chip_gen: v7x
topology: tpu7x:2x2x1
jax: 0.10.0
libtpu: 0.0.40
codegen_flags: <defaults>
</compile_context>

<pallas_src>
import functools

import jax
import jax.numpy as jnp
import numpy as np
from jax import lax
from jax.experimental import pallas as pl
from jax.experimental.pallas import tpu as pltpu


def _round_up(x, m):
    return ((x + m - 1) // m) * m


# VMEM budget used when sizing the time chunk. 36 MiB of buffers (+8 MiB
# headroom in vmem_limit_bytes) is safe on v7x's 64 MiB physical VMEM and
# conservative on v5e/v6e (128 MiB).
_VMEM_BUDGET_BYTES = 36 << 20
_VMEM_LIMIT_CAP_BYTES = 48 << 20


def _pick_time_chunk(S, Bb, Hp, xp_itemsize, out_itemsize):
    """Largest time chunk whose double-buffered tiles fit the VMEM budget."""
    G = 4 * Hp
    fixed = (2 * Hp * G * 2            # W_hh^T (bf16), double-buffered
             + 2 * 2 * Bb * Hp * 4     # hn/cn (f32), double-buffered
             + 2 * Bb * Hp * 4)        # h/c state scratch (f32)
    per_t = 2 * Bb * G * xp_itemsize + 2 * Bb * Hp * out_itemsize
    t_budget = max(1, (_VMEM_BUDGET_BYTES - fixed) // per_t)
    return int(max(1, min(S, t_budget, 128)))


# ----------------------------------------------------------------------------
# Pallas kernel: recurrent part of one LSTM layer.
# Grid = (batch_block [parallel], time_chunk [arbitrary, sequential]).
# h/c state lives in VMEM scratch across the time-chunk axis.
# ----------------------------------------------------------------------------
def _lstm_recur_kernel(xp_ref, whh_ref, out_ref, hn_ref, cn_ref, h_scr, c_scr,
                       *, seq_len, time_chunk, needs_mask):
    """One grid step = T timesteps of the recurrence for one batch block.

    xp_ref : (T, Bb, 4*Hp) bf16   precomputed x @ W_ih^T + b (gate-lane-aligned)
    whh_ref: (Hp, 4*Hp)    bf16   W_hh^T, constant block index (VMEM resident)
    out_ref: (T, Bb, Hp)          lstm_out chunk
    hn/cn  : (Bb, Hp)      f32    final state (written on the last time chunk)
    h/c_scr: (Bb, Hp)      f32    recurrent state, persists across time chunks
    """
    s = pl.program_id(1)           # time-chunk index (sequential)
    Hp = h_scr.shape[-1]
    T = time_chunk

    @pl.when(s == 0)
    def _():
        # h_0 = c_0 = zeros, as in the PyTorch forward.
        h_scr[...] = jnp.zeros_like(h_scr)
        c_scr[...] = jnp.zeros_like(c_scr)

    whh = whh_ref[...]             # bf16, stays resident across the grid

    def body(t, carry):
        h, c = carry
        gates = xp_ref[t].astype(jnp.float32) + jnp.dot(
            h.astype(jnp.bfloat16), whh, preferred_element_type=jnp.float32)
        i_g = jax.nn.sigmoid(gates[:, 0 * Hp:1 * Hp])
        f_g = jax.nn.sigmoid(gates[:, 1 * Hp:2 * Hp])
        g_g = jnp.tanh(gates[:, 2 * Hp:3 * Hp])
        o_g = jax.nn.sigmoid(gates[:, 3 * Hp:4 * Hp])
        c_new = f_g * c + i_g * g_g
        h_new = o_g * jnp.tanh(c_new)
        out_ref[t] = h_new.astype(out_ref.dtype)
        if needs_mask:
            # Tail timesteps beyond the real sequence length must not advance
            # the state (they only exist because S was padded to a multiple
            # of T). Arithmetic blend keeps lowering trivially VPU-friendly.
            keep = ((s * T + t) < seq_len).astype(jnp.float32)
            h = keep * h_new + (1.0 - keep) * h
            c = keep * c_new + (1.0 - keep) * c
        else:
            h, c = h_new, c_new
        return h, c

    h, c = lax.fori_loop(0, T, body, (h_scr[...], c_scr[...]),
                         unroll=min(T, 8))
    h_scr[...] = h
    c_scr[...] = c

    @pl.when(s == pl.num_programs(1) - 1)
    def _():
        hn_ref[...] = h
        cn_ref[...] = c


def lstm_recurrence(x_proj, w_hh_t, hp, time_chunk, seq_len, out_dtype):
    """Run the recurrent part of one LSTM layer.

    x_proj:  (Sp, nb, Bb, 4*Hp) bf16  -- x @ W_ih^T + (b_ih + b_hh), padded
    w_hh_t:  (Hp, 4*Hp)         bf16
    Returns (out (Sp, nb, Bb, Hp), h_n (nb, Bb, Hp), c_n (nb, Bb, Hp)).
    """
    Sp, nb, Bb, G = x_proj.shape
    T = time_chunk
    assert Sp % T == 0 and G == 4 * hp
    nt = Sp // T
    needs_mask = (Sp != seq_len)

    kernel = functools.partial(_lstm_recur_kernel, seq_len=seq_len,
                               time_chunk=T, needs_mask=needs_mask)

    # Explicit VMEM budget: double-buffered xp/out chunks + resident weight +
    # hn/cn blocks + state scratch, plus headroom (capped for v7x's 64 MiB).
    xp_isize = x_proj.dtype.itemsize
    out_isize = jnp.dtype(out_dtype).itemsize
    needed = (2 * hp * G * w_hh_t.dtype.itemsize
              + 2 * T * Bb * G * xp_isize
              + 2 * T * Bb * hp * out_isize
              + (2 * 2 + 2) * Bb * hp * 4)
    vmem_limit = int(min(max(needed + (8 << 20), 16 << 20),
                         _VMEM_LIMIT_CAP_BYTES))

    return pl.pallas_call(
        kernel,
        out_shape=(
            jax.ShapeDtypeStruct((Sp, nb, Bb, hp), out_dtype),   # lstm_out
            jax.ShapeDtypeStruct((nb, Bb, hp), jnp.float32),     # h_n
            jax.ShapeDtypeStruct((nb, Bb, hp), jnp.float32),     # c_n
        ),
        grid_spec=pltpu.PrefetchScalarGridSpec(
            num_scalar_prefetch=0,
            grid=(nb, nt),
            in_specs=[
                # x_proj chunk for (batch block b, time chunk s)
                pl.BlockSpec((T, None, Bb, G), lambda b, s: (s, b, 0, 0)),
                # W_hh^T: constant block index -> stays resident in VMEM
                pl.BlockSpec((hp, G), lambda b, s: (0, 0)),
            ],
            out_specs=[
                pl.BlockSpec((T, None, Bb, hp), lambda b, s: (s, b, 0, 0)),
                pl.BlockSpec((None, Bb, hp), lambda b, s: (b, 0, 0)),
                pl.BlockSpec((None, Bb, hp), lambda b, s: (b, 0, 0)),
            ],
            scratch_shapes=[
                pltpu.VMEM((Bb, hp), jnp.float32),   # h state
                pltpu.VMEM((Bb, hp), jnp.float32),   # c state
            ],
        ),
        compiler_params=pltpu.CompilerParams(
            # batch blocks are independent (-> both v7x TCs); the time axis is
            # a true recurrence and must stay sequential.
            dimension_semantics=("parallel", "arbitrary"),
            vmem_limit_bytes=vmem_limit,
        ),
    )(x_proj, w_hh_t)


class LSTMEncoderPallas:
    """Pallas equivalent of the PyTorch lstm_encoder module."""

    def __init__(self, input_size, hidden_size, num_layers, key):
        self.input_size = input_size
        self.hidden_size = hidden_size
        self.num_layers = num_layers
        self.Hp = _round_up(hidden_size, 128)   # lane-aligned hidden dim
        # TODO(synk): for hidden_size << 128 a tighter 4*H-padded gate layout
        # (gate split via in-vreg roll/select) would avoid the per-gate 128-lane
        # padding blow-up; kept the lane-aligned per-gate layout here.

        bound = 1.0 / np.sqrt(hidden_size)
        H, Hp = hidden_size, self.Hp
        self.params = []   # raw PyTorch-layout f32 params (used by the reference)
        self.padded = []   # lane-aligned bf16 params used by the kernels
        for layer in range(num_layers):
            in_sz = input_size if layer == 0 else hidden_size
            key, k1, k2, k3, k4 = jax.random.split(key, 5)
            w_ih = jax.random.uniform(k1, (4 * H, in_sz), jnp.float32, -bound, bound)
            w_hh = jax.random.uniform(k2, (4 * H, H), jnp.float32, -bound, bound)
            b_ih = jax.random.uniform(k3, (4 * H,), jnp.float32, -bound, bound)
            b_hh = jax.random.uniform(k4, (4 * H,), jnp.float32, -bound, bound)
            self.params.append((w_ih, w_hh, b_ih, b_hh))

            # Lane-aligned gate layout: gate g occupies columns [g*Hp, g*Hp+H).
            # W_ih^T keeps only the real in_sz (or H) contraction rows; the
            # wrapper slices padded inputs down to the real hidden columns.
            w_ih_t = jnp.transpose(w_ih)   # (in_sz, 4H)
            w_hh_t = jnp.transpose(w_hh)   # (H, 4H)
            b = b_ih + b_hh                # (4H,)
            w_ih_p = jnp.zeros((in_sz, 4 * Hp), jnp.float32)
            w_hh_p = jnp.zeros((Hp, 4 * Hp), jnp.float32)
            b_p = jnp.zeros((4 * Hp,), jnp.float32)
            for g in range(4):
                w_ih_p = w_ih_p.at[:, g * Hp:g * Hp + H].set(
                    w_ih_t[:, g * H:(g + 1) * H])
                w_hh_p = w_hh_p.at[:H, g * Hp:g * Hp + H].set(
                    w_hh_t[:, g * H:(g + 1) * H])
                b_p = b_p.at[g * Hp:g * Hp + H].set(b[g * H:(g + 1) * H])
            # bf16 weights: halves resident VMEM / HBM traffic; MXU still
            # accumulates in f32 via preferred_element_type.
            self.padded.append((w_ih_p.astype(jnp.bfloat16),
                                w_hh_p.astype(jnp.bfloat16),
                                b_p))

    def __call__(self, x_input, max_time_chunk=None):
        # x_input: (seq_len, batch, input_size)  (PyTorch, batch_first=False)
        S, B, _ = x_input.shape
        H, Hp = self.hidden_size, self.Hp

        Bp = _round_up(B, 8)            # sublane-aligned batch
        if Bp >= 16:
            # Two batch blocks -> the "parallel" grid axis can occupy both
            # TensorCores on v7x (sequential / no-op on 1-TC v5e/v6e).
            Bp = _round_up(Bp, 16)
            nb = 2
        else:
            nb = 1
        Bb = Bp // nb

        x = x_input.reshape(S, B, self.input_size).astype(jnp.float32)
        cur = jnp.pad(x, ((0, 0), (0, Bp - B), (0, 0)))   # (S, Bp, in)

        hs, cs = [], []
        for li, (w_ih_p, w_hh_p, b_p) in enumerate(self.padded):
            # Contract only over the real feature columns (padded hidden
            # columns of the previous layer are exactly zero anyway).
            inp = cur if li == 0 else cur[:, :, :H]       # (S, Bp, K)
            K = inp.shape[-1]

            # Hoisted, time-parallel input projection: one flat bf16 GEMM over
            # all timesteps (MXU-friendly), outside the serial recurrence.
            xp = jnp.dot(inp.reshape(S * Bp, K).astype(jnp.bfloat16), w_ih_p,
                         preferred_element_type=jnp.float32) + b_p
            xp = xp.astype(jnp.bfloat16).reshape(S, Bp, 4 * Hp)

            out_dtype = jnp.float32 if li == self.num_layers - 1 else jnp.bfloat16
            T = _pick_time_chunk(S, Bb, Hp, 2, jnp.dtype(out_dtype).itemsize)
            if max_time_chunk is not None:
                T = max(1, min(T, int(max_time_chunk)))
            Sp = _round_up(S, T)
            if Sp != S:   # pad the time axis; tail timesteps are masked in-kernel
                xp = jnp.pad(xp, ((0, Sp - S), (0, 0), (0, 0)))
            xp = xp.reshape(Sp, nb, Bb, 4 * Hp)           # free reshape

            out, h_n, c_n = lstm_recurrence(xp, w_hh_p, Hp, T, S, out_dtype)

            cur = out.reshape(Sp, Bp, Hp)[:S]
            h_n = h_n.reshape(Bp, Hp)
            c_n = c_n.reshape(Bp, Hp)
            hs.append(h_n[:B, :H])
            cs.append(c_n[:B, :H])

        # TODO(synk): wavefront pipelining across layers (start layer l+1's
        # chunk as soon as layer l produced it) would hide most of the serial
        # recurrence latency for num_layers >= 2.
        lstm_out = cur[:, :B, :H].astype(jnp.float32)
        hn = jnp.stack(hs, axis=0)   # (num_layers, B, H)
        cn = jnp.stack(cs, axis=0)   # (num_layers, B, H)
        return lstm_out, (hn, cn)


# ----------------------------------------------------------------------------
# Pure-JAX reference (lax.scan, f32) to validate the kernel's semantics.
# ----------------------------------------------------------------------------
def lstm_reference(x, params, hidden_size):
    H = hidden_size
    hs, cs = [], []
    for (w_ih, w_hh, b_ih, b_hh) in params:
        def step(carry, x_t):
            h, c = carry
            gates = x_t @ w_ih.T + h @ w_hh.T + b_ih + b_hh
            i = jax.nn.sigmoid(gates[:, 0 * H:1 * H])
            f = jax.nn.sigmoid(gates[:, 1 * H:2 * H])
            g = jnp.tanh(gates[:, 2 * H:3 * H])
            o = jax.nn.sigmoid(gates[:, 3 * H:4 * H])
            c = f * c + i * g
            h = o * jnp.tanh(c)
            return (h, c), h

        B = x.shape[1]
        init = (jnp.zeros((B, H), jnp.float32), jnp.zeros((B, H), jnp.float32))
        (h_n, c_n), out = lax.scan(step, init, x)
        x = out
        hs.append(h_n)
        cs.append(c_n)
    return x, (jnp.stack(hs, 0), jnp.stack(cs, 0))


if __name__ == "__main__":
    key = jax.random.PRNGKey(0)
    key, pkey = jax.random.split(key)

    input_size, hidden_size, num_layers = 16, 32, 2
    enc = LSTMEncoderPallas(input_size, hidden_size, num_layers, pkey)

    # bf16 storage of x_proj / intermediate activations -> bf16-level tolerance
    # vs. the f32 reference (the MXU rounds matmul operands toward bf16 under
    # default precision anyway).
    TOL = dict(rtol=3e-2, atol=3e-2)

    # Case 1: small shapes; the whole sequence fits one time chunk.
    key, k1 = jax.random.split(key)
    x1 = jax.random.normal(k1, (8, 4, input_size), jnp.float32)
    out1, (hn1, cn1) = enc(x1)
    jax.block_until_ready((out1, hn1, cn1))
    ref1, (rhn1, rcn1) = lstm_reference(x1, enc.params, hidden_size)
    np.testing.assert_allclose(np.asarray(out1), np.asarray(ref1), **TOL)
    np.testing.assert_allclose(np.asarray(hn1), np.asarray(rhn1), **TOL)
    np.testing.assert_allclose(np.asarray(cn1), np.asarray(rcn1), **TOL)

    # Case 2: odd seq_len (exercises padded-tail masking across time chunks)
    # and batch >= 16 (exercises the two-batch-block "parallel" grid axis).
    key, k2 = jax.random.split(key)
    x2 = jax.random.normal(k2, (7, 12, input_size), jnp.float32)
    out2, (hn2, cn2) = enc(x2, max_time_chunk=4)
    jax.block_until_ready((out2, hn2, cn2))
    ref2, (rhn2, rcn2) = lstm_reference(x2, enc.params, hidden_size)
    np.testing.assert_allclose(np.asarray(out2), np.asarray(ref2), **TOL)
    np.testing.assert_allclose(np.asarray(hn2), np.asarray(rhn2), **TOL)
    np.testing.assert_allclose(np.asarray(cn2), np.asarray(rcn2), **TOL)

    print("KERNEL_OK")
</pallas_src>

<mosaic_0001>
module attributes {stable_mosaic.version = 11 : i64} {
  func.func @_lstm_recur_kernel(%arg0: i32, %arg1: i32, %arg2: memref<8x1x8x512xbf16, #tpu.memory_space<vmem>>, %arg3: memref<128x512xbf16, #tpu.memory_space<vmem>>, %arg4: memref<8x1x8x128xbf16, #tpu.memory_space<vmem>>, %arg5: memref<1x8x128xf32, #tpu.memory_space<vmem>>, %arg6: memref<1x8x128xf32, #tpu.memory_space<vmem>>, %arg7: memref<8x128xf32, #tpu.memory_space<vmem>>, %arg8: memref<8x128xf32, #tpu.memory_space<vmem>>) attributes {dimension_semantics = [#tpu.dimension_semantics<parallel>, #tpu.dimension_semantics<arbitrary>], iteration_bounds = array<i64: 1, 1>, scalar_prefetch = 0 : i64, scratch_operands = 2 : i64, tpu.core_type = #tpu.core_type<tc>, window_params = [{transform_indices = @transform_0, window_bounds = array<i64: 8, 1, 8, 512>}, {pipeline_mode = #tpu.pipeline_mode<synchronous>, transform_indices = @transform_1, window_bounds = array<i64: 128, 512>}, {transform_indices = @transform_2, window_bounds = array<i64: 8, 1, 8, 128>}, {transform_indices = @transform_3, window_bounds = array<i64: 1, 8, 128>}, {transform_indices = @transform_4, window_bounds = array<i64: 1, 8, 128>}]} {
    %c0_i32 = arith.constant 0 : i32
    %0 = arith.cmpi eq, %arg1, %c0_i32 : i32
    %1 = arith.extui %0 : i1 to i32
    %c0_i32_0 = arith.constant 0 : i32
    %2 = arith.cmpi ne, %1, %c0_i32_0 : i32
    scf.if %2 {
      %cst_92 = arith.constant 0.000000e+00 : f32
      %307 = vector.broadcast %cst_92 : f32 to vector<8x128xf32>
      %c0_93 = arith.constant 0 : index
      %c0_94 = arith.constant 0 : index
      %308 = vector.load %arg7[%c0_93, %c0_94] : memref<8x128xf32, #tpu.memory_space<vmem>>, vector<8x128xf32>
      tpu.vector_store %arg7[%c0_93, %c0_94], %307 {strides = array<i32>} : memref<8x128xf32, #tpu.memory_space<vmem>>, vector<8x128xf32>,
      %cst_95 = arith.constant 0.000000e+00 : f32
      %309 = vector.broadcast %cst_95 : f32 to vector<8x128xf32>
      %c0_96 = arith.constant 0 : index
      %c0_97 = arith.constant 0 : index
      %310 = vector.load %arg8[%c0_96, %c0_97] : memref<8x128xf32, #tpu.memory_space<vmem>>, vector<8x128xf32>
      tpu.vector_store %arg8[%c0_96, %c0_97], %309 {strides = array<i32>} : memref<8x128xf32, #tpu.memory_space<vmem>>, vector<8x128xf32>,
    } else {
    }
    %c0 = arith.constant 0 : index
    %c0_1 = arith.constant 0 : index
    %3 = vector.load %arg3[%c0, %c0_1] : memref<128x512xbf16, #tpu.memory_space<vmem>>, vector<128x512xbf16>
    %c0_2 = arith.constant 0 : index
    %c0_3 = arith.constant 0 : index
    %4 = vector.load %arg7[%c0_2, %c0_3] : memref<8x128xf32, #tpu.memory_space<vmem>>, vector<8x128xf32>
    %c0_4 = arith.constant 0 : index
    %c0_5 = arith.constant 0 : index
    %5 = vector.load %arg8[%c0_4, %c0_5] : memref<8x128xf32, #tpu.memory_space<vmem>>, vector<8x128xf32>
    %c0_i32_6 = arith.constant 0 : i32
    %6 = arith.index_cast %c0_i32_6 : i32 to index
    %c0_7 = arith.constant 0 : index
    %c0_8 = arith.constant 0 : index
    %c0_9 = arith.constant 0 : index
    %7 = vector.load %arg2[%6, %c0_7, %c0_8, %c0_9] : memref<8x1x8x512xbf16, #tpu.memory_space<vmem>>, vector<1x1x8x512xbf16>
    %8 = vector.shape_cast %7 : vector<1x1x8x512xbf16> to vector<8x512xbf16>
    %9 = arith.extf %8 : vector<8x512xbf16> to vector<8x512xf32>
    %10 = arith.truncf %4 : vector<8x128xf32> to vector<8x128xbf16>
    %cst = arith.constant dense<0.000000e+00> : vector<8x512xf32>
    %11 = tpu.matmul %10, %3, %cst {dimension_numbers = #tpu.dot_dimension_numbers<[1], [0], [0], [1], [0, 0, 1, 1], [], []>} : vector<8x128xbf16>, vector<128x512xbf16>, vector<8x512xf32> -> vector<8x512xf32>
    %12 = arith.addf %9, %11 : vector<8x512xf32>
    %13 = vector.extract_strided_slice %12 {offsets = [0, 0], sizes = [8, 128], strides = [1, 1]} : vector<8x512xf32> to vector<8x128xf32>
    %14 = arith.negf %13 : vector<8x128xf32>
    %15 = math.exp %14 : vector<8x128xf32>
    %cst_10 = arith.constant 1.000000e+00 : f32
    %16 = vector.broadcast %cst_10 : f32 to vector<8x128xf32>
    %17 = arith.addf %16, %15 : vector<8x128xf32>
    %18 = arith.divf %16, %17 : vector<8x128xf32>
    %19 = vector.extract_strided_slice %12 {offsets = [0, 128], sizes = [8, 128], strides = [1, 1]} : vector<8x512xf32> to vector<8x128xf32>
    %20 = arith.negf %19 : vector<8x128xf32>
    %21 = math.exp %20 : vector<8x128xf32>
    %cst_11 = arith.constant 1.000000e+00 : f32
    %22 = vector.broadcast %cst_11 : f32 to vector<8x128xf32>
    %23 = arith.addf %22, %21 : vector<8x128xf32>
    %24 = arith.divf %22, %23 : vector<8x128xf32>
    %25 = vector.extract_strided_slice %12 {offsets = [0, 256], sizes = [8, 128], strides = [1, 1]} : vector<8x512xf32> to vector<8x128xf32>
    %26 = math.tanh %25 : vector<8x128xf32>
    %27 = vector.extract_strided_slice %12 {offsets = [0, 384], sizes = [8, 128], strides = [1, 1]} : vector<8x512xf32> to vector<8x128xf32>
    %28 = arith.negf %27 : vector<8x128xf32>
    %29 = math.exp %28 : vector<8x128xf32>
    %cst_12 = arith.constant 1.000000e+00 : f32
    %30 = vector.broadcast %cst_12 : f32 to vector<8x128xf32>
    %31 = arith.addf %30, %29 : vector<8x128xf32>
    %32 = arith.divf %30, %31 : vector<8x128xf32>
    %33 = arith.mulf %24, %5 : vector<8x128xf32>
    %34 = arith.mulf %18, %26 : vector<8x128xf32>
    %35 = arith.addf %33, %34 : vector<8x128xf32>
    %36 = math.tanh %35 : vector<8x128xf32>
    %37 = arith.mulf %32, %36 : vector<8x128xf32>
    %38 = arith.truncf %37 : vector<8x128xf32> to vector<8x128xbf16>
    %39 = arith.index_cast %c0_i32_6 : i32 to index
    %c0_13 = arith.constant 0 : index
    %c0_14 = arith.constant 0 : index
    %c0_15 = arith.constant 0 : index
    %40 = vector.load %arg4[%39, %c0_13, %c0_14, %c0_15] : memref<8x1x8x128xbf16, #tpu.memory_space<vmem>>, vector<1x1x8x128xbf16>
    %41 = vector.shape_cast %40 : vector<1x1x8x128xbf16> to vector<8x128xbf16>
    %42 = vector.shape_cast %38 : vector<8x128xbf16> to vector<1x1x8x128xbf16>
    tpu.vector_store %arg4[%39, %c0_13, %c0_14, %c0_15], %42 {strides = array<i32>} : memref<8x1x8x128xbf16, #tpu.memory_space<vmem>>, vector<1x1x8x128xbf16>,
    %c1_i32 = arith.constant 1 : i32
    %43 = arith.index_cast %c1_i32 : i32 to index
    %c0_16 = arith.constant 0 : index
    %c0_17 = arith.constant 0 : index
    %c0_18 = arith.constant 0 : index
    %44 = vector.load %arg2[%43, %c0_16, %c0_17, %c0_18] : memref<8x1x8x512xbf16, #tpu.memory_space<vmem>>, vector<1x1x8x512xbf16>
    %45 = vector.shape_cast %44 : vector<1x1x8x512xbf16> to vector<8x512xbf16>
    %46 = arith.extf %45 : vector<8x512xbf16> to vector<8x512xf32>
    %47 = arith.truncf %37 : vector<8x128xf32> to vector<8x128xbf16>
    %cst_19 = arith.constant dense<0.000000e+00> : vector<8x512xf32>
    %48 = tpu.matmul %47, %3, %cst_19 {dimension_numbers = #tpu.dot_dimension_numbers<[1], [0], [0], [1], [0, 0, 1, 1], [], []>} : vector<8x128xbf16>, vector<128x512xbf16>, vector<8x512xf32> -> vector<8x512xf32>
    %49 = arith.addf %46, %48 : vector<8x512xf32>
    %50 = vector.extract_strided_slice %49 {offsets = [0, 0], sizes = [8, 128], strides = [1, 1]} : vector<8x512xf32> to vector<8x128xf32>
    %51 = arith.negf %50 : vector<8x128xf32>
    %52 = math.exp %51 : vector<8x128xf32>
    %cst_20 = arith.constant 1.000000e+00 : f32
    %53 = vector.broadcast %cst_20 : f32 to vector<8x128xf32>
    %54 = arith.addf %53, %52 : vector<8x128xf32>
    %55 = arith.divf %53, %54 : vector<8x128xf32>
    %56 = vector.extract_strided_slice %49 {offsets = [0, 128], sizes = [8, 128], strides = [1, 1]} : vector<8x512xf32> to vector<8x128xf32>
    %57 = arith.negf %56 : vector<8x128xf32>
    %58 = math.exp %57 : vector<8x128xf32>
    %cst_21 = arith.constant 1.000000e+00 : f32
    %59 = vector.broadcast %cst_21 : f32 to vector<8x128xf32>
    %60 = arith.addf %59, %58 : vector<8x128xf32>
    %61 = arith.divf %59, %60 : vector<8x128xf32>
    %62 = vector.extract_strided_slice %49 {offsets = [0, 256], sizes = [8, 128], strides = [1, 1]} : vector<8x512xf32> to vector<8x128xf32>
    %63 = math.tanh %62 : vector<8x128xf32>
    %64 = vector.extract_strided_slice %49 {offsets = [0, 384], sizes = [8, 128], strides = [1, 1]} : vector<8x512xf32> to vector<8x128xf32>
    %65 = arith.negf %64 : vector<8x128xf32>
    %66 = math.exp %65 : vector<8x128xf32>
    %cst_22 = arith.constant 1.000000e+00 : f32
    %67 = vector.broadcast %cst_22 : f32 to vector<8x128xf32>
    %68 = arith.addf %67, %66 : vector<8x128xf32>
    %69 = arith.divf %67, %68 : vector<8x128xf32>
    %70 = arith.mulf %61, %35 : vector<8x128xf32>
    %71 = arith.mulf %55, %63 : vector<8x128xf32>
    %72 = arith.addf %70, %71 : vector<8x128xf32>
    %73 = math.tanh %72 : vector<8x128xf32>
    %74 = arith.mulf %69, %73 : vector<8x128xf32>
    %75 = arith.truncf %74 : vector<8x128xf32> to vector<8x128xbf16>
    %76 = arith.index_cast %c1_i32 : i32 to index
    %c0_23 = arith.constant 0 : index
    %c0_24 = arith.constant 0 : index
    %c0_25 = arith.constant 0 : index
    %77 = vector.load %arg4[%76, %c0_23, %c0_24, %c0_25] : memref<8x1x8x128xbf16, #tpu.memory_space<vmem>>, vector<1x1x8x128xbf16>
    %78 = vector.shape_cast %77 : vector<1x1x8x128xbf16> to vector<8x128xbf16>
    %79 = vector.shape_cast %75 : vector<8x128xbf16> to vector<1x1x8x128xbf16>
    tpu.vector_store %arg4[%76, %c0_23, %c0_24, %c0_25], %79 {strides = array<i32>} : memref<8x1x8x128xbf16, #tpu.memory_space<vmem>>, vector<1x1x8x128xbf16>,
    %c2_i32 = arith.constant 2 : i32
    %80 = arith.index_cast %c2_i32 : i32 to index
    %c0_26 = arith.constant 0 : index
    %c0_27 = arith.constant 0 : index
    %c0_28 = arith.constant 0 : index
    %81 = vector.load %arg2[%80, %c0_26, %c0_27, %c0_28] : memref<8x1x8x512xbf16, #tpu.memory_space<vmem>>, vector<1x1x8x512xbf16>
    %82 = vector.shape_cast %81 : vector<1x1x8x512xbf16> to vector<8x512xbf16>
    %83 = arith.extf %82 : vector<8x512xbf16> to vector<8x512xf32>
    %84 = arith.truncf %74 : vector<8x128xf32> to vector<8x128xbf16>
    %cst_29 = arith.constant dense<0.000000e+00> : vector<8x512xf32>
    %85 = tpu.matmul %84, %3, %cst_29 {dimension_numbers = #tpu.dot_dimension_numbers<[1], [0], [0], [1], [0, 0, 1, 1], [], []>} : vector<8x128xbf16>, vector<128x512xbf16>, vector<8x512xf32> -> vector<8x512xf32>
    %86 = arith.addf %83, %85 : vector<8x512xf32>
    %87 = vector.extract_strided_slice %86 {offsets = [0, 0], sizes = [8, 128], strides = [1, 1]} : vector<8x512xf32> to vector<8x128xf32>
    %88 = arith.negf %87 : vector<8x128xf32>
    %89 = math.exp %88 : vector<8x128xf32>
    %cst_30 = arith.constant 1.000000e+00 : f32
    %90 = vector.broadcast %cst_30 : f32 to vector<8x128xf32>
    %91 = arith.addf %90, %89 : vector<8x128xf32>
    %92 = arith.divf %90, %91 : vector<8x128xf32>
    %93 = vector.extract_strided_slice %86 {offsets = [0, 128], sizes = [8, 128], strides = [1, 1]} : vector<8x512xf32> to vector<8x128xf32>
    %94 = arith.negf %93 : vector<8x128xf32>
    %95 = math.exp %94 : vector<8x128xf32>
    %cst_31 = arith.constant 1.000000e+00 : f32
    %96 = vector.broadcast %cst_31 : f32 to vector<8x128xf32>
    %97 = arith.addf %96, %95 : vector<8x128xf32>
    %98 = arith.divf %96, %97 : vector<8x128xf32>
    %99 = vector.extract_strided_slice %86 {offsets = [0, 256], sizes = [8, 128], strides = [1, 1]} : vector<8x512xf32> to vector<8x128xf32>
    %100 = math.tanh %99 : vector<8x128xf32>
    %101 = vector.extract_strided_slice %86 {offsets = [0, 384], sizes = [8, 128], strides = [1, 1]} : vector<8x512xf32> to vector<8x128xf32>
    %102 = arith.negf %101 : vector<8x128xf32>
    %103 = math.exp %102 : vector<8x128xf32>
    %cst_32 = arith.constant 1.000000e+00 : f32
    %104 = vector.broadcast %cst_32 : f32 to vector<8x128xf32>
    %105 = arith.addf %104, %103 : vector<8x128xf32>
    %106 = arith.divf %104, %105 : vector<8x128xf32>
    %107 = arith.mulf %98, %72 : vector<8x128xf32>
    %108 = arith.mulf %92, %100 : vector<8x128xf32>
    %109 = arith.addf %107, %108 : vector<8x128xf32>
    %110 = math.tanh %109 : vector<8x128xf32>
    %111 = arith.mulf %106, %110 : vector<8x128xf32>
    %112 = arith.truncf %111 : vector<8x128xf32> to vector<8x128xbf16>
    %113 = arith.index_cast %c2_i32 : i32 to index
    %c0_33 = arith.constant 0 : index
    %c0_34 = arith.constant 0 : index
    %c0_35 = arith.constant 0 : index
    %114 = vector.load %arg4[%113, %c0_33, %c0_34, %c0_35] : memref<8x1x8x128xbf16, #tpu.memory_space<vmem>>, vector<1x1x8x128xbf16>
    %115 = vector.shape_cast %114 : vector<1x1x8x128xbf16> to vector<8x128xbf16>
    %116 = vector.shape_cast %112 : vector<8x128xbf16> to vector<1x1x8x128xbf16>
    tpu.vector_store %arg4[%113, %c0_33, %c0_34, %c0_35], %116 {strides = array<i32>} : memref<8x1x8x128xbf16, #tpu.memory_space<vmem>>, vector<1x1x8x128xbf16>,
    %c3_i32 = arith.constant 3 : i32
    %117 = arith.index_cast %c3_i32 : i32 to index
    %c0_36 = arith.constant 0 : index
    %c0_37 = arith.constant 0 : index
    %c0_38 = arith.constant 0 : index
    %118 = vector.load %arg2[%117, %c0_36, %c0_37, %c0_38] : memref<8x1x8x512xbf16, #tpu.memory_space<vmem>>, vector<1x1x8x512xbf16>
    %119 = vector.shape_cast %118 : vector<1x1x8x512xbf16> to vector<8x512xbf16>
    %120 = arith.extf %119 : vector<8x512xbf16> to vector<8x512xf32>
    %121 = arith.truncf %111 : vector<8x128xf32> to vector<8x128xbf16>
    %cst_39 = arith.constant dense<0.000000e+00> : vector<8x512xf32>
    %122 = tpu.matmul %121, %3, %cst_39 {dimension_numbers = #tpu.dot_dimension_numbers<[1], [0], [0], [1], [0, 0, 1, 1], [], []>} : vector<8x128xbf16>, vector<128x512xbf16>, vector<8x512xf32> -> vector<8x512xf32>
    %123 = arith.addf %120, %122 : vector<8x512xf32>
    %124 = vector.extract_strided_slice %123 {offsets = [0, 0], sizes = [8, 128], strides = [1, 1]} : vector<8x512xf32> to vector<8x128xf32>
    %125 = arith.negf %124 : vector<8x128xf32>
    %126 = math.exp %125 : vector<8x128xf32>
    %cst_40 = arith.constant 1.000000e+00 : f32
    %127 = vector.broadcast %cst_40 : f32 to vector<8x128xf32>
    %128 = arith.addf %127, %126 : vector<8x128xf32>
    %129 = arith.divf %127, %128 : vector<8x128xf32>
    %130 = vector.extract_strided_slice %123 {offsets = [0, 128], sizes = [8, 128], strides = [1, 1]} : vector<8x512xf32> to vector<8x128xf32>
    %131 = arith.negf %130 : vector<8x128xf32>
    %132 = math.exp %131 : vector<8x128xf32>
    %cst_41 = arith.constant 1.000000e+00 : f32
    %133 = vector.broadcast %cst_41 : f32 to vector<8x128xf32>
    %134 = arith.addf %133, %132 : vector<8x128xf32>
    %135 = arith.divf %133, %134 : vector<8x128xf32>
    %136 = vector.extract_strided_slice %123 {offsets = [0, 256], sizes = [8, 128], strides = [1, 1]} : vector<8x512xf32> to vector<8x128xf32>
    %137 = math.tanh %136 : vector<8x128xf32>
    %138 = vector.extract_strided_slice %123 {offsets = [0, 384], sizes = [8, 128], strides = [1, 1]} : vector<8x512xf32> to vector<8x128xf32>
    %139 = arith.negf %138 : vector<8x128xf32>
    %140 = math.exp %139 : vector<8x128xf32>
    %cst_42 = arith.constant 1.000000e+00 : f32
    %141 = vector.broadcast %cst_42 : f32 to vector<8x128xf32>
    %142 = arith.addf %141, %140 : vector<8x128xf32>
    %143 = arith.divf %141, %142 : vector<8x128xf32>
    %144 = arith.mulf %135, %109 : vector<8x128xf32>
    %145 = arith.mulf %129, %137 : vector<8x128xf32>
    %146 = arith.addf %144, %145 : vector<8x128xf32>
    %147 = math.tanh %146 : vector<8x128xf32>
    %148 = arith.mulf %143, %147 : vector<8x128xf32>
    %149 = arith.truncf %148 : vector<8x128xf32> to vector<8x128xbf16>
    %150 = arith.index_cast %c3_i32 : i32 to index
    %c0_43 = arith.constant 0 : index
    %c0_44 = arith.constant 0 : index
    %c0_45 = arith.constant 0 : index
    %151 = vector.load %arg4[%150, %c0_43, %c0_44, %c0_45] : memref<8x1x8x128xbf16, #tpu.memory_space<vmem>>, vector<1x1x8x128xbf16>
    %152 = vector.shape_cast %151 : vector<1x1x8x128xbf16> to vector<8x128xbf16>
    %153 = vector.shape_cast %149 : vector<8x128xbf16> to vector<1x1x8x128xbf16>
    tpu.vector_store %arg4[%150, %c0_43, %c0_44, %c0_45], %153 {strides = array<i32>} : memref<8x1x8x128xbf16, #tpu.memory_space<vmem>>, vector<1x1x8x128xbf16>,
    %c4_i32 = arith.constant 4 : i32
    %154 = arith.index_cast %c4_i32 : i32 to index
    %c0_46 = arith.constant 0 : index
    %c0_47 = arith.constant 0 : index
    %c0_48 = arith.constant 0 : index
    %155 = vector.load %arg2[%154, %c0_46, %c0_47, %c0_48] : memref<8x1x8x512xbf16, #tpu.memory_space<vmem>>, vector<1x1x8x512xbf16>
    %156 = vector.shape_cast %155 : vector<1x1x8x512xbf16> to vector<8x512xbf16>
    %157 = arith.extf %156 : vector<8x512xbf16> to vector<8x512xf32>
    %158 = arith.truncf %148 : vector<8x128xf32> to vector<8x128xbf16>
    %cst_49 = arith.constant dense<0.000000e+00> : vector<8x512xf32>
    %159 = tpu.matmul %158, %3, %cst_49 {dimension_numbers = #tpu.dot_dimension_numbers<[1], [0], [0], [1], [0, 0, 1, 1], [], []>} : vector<8x128xbf16>, vector<128x512xbf16>, vector<8x512xf32> -> vector<8x512xf32>
    %160 = arith.addf %157, %159 : vector<8x512xf32>
    %161 = vector.extract_strided_slice %160 {offsets = [0, 0], sizes = [8, 128], strides = [1, 1]} : vector<8x512xf32> to vector<8x128xf32>
    %162 = arith.negf %161 : vector<8x128xf32>
    %163 = math.exp %162 : vector<8x128xf32>
    %cst_50 = arith.constant 1.000000e+00 : f32
    %164 = vector.broadcast %cst_50 : f32 to vector<8x128xf32>
    %165 = arith.addf %164, %163 : vector<8x128xf32>
    %166 = arith.divf %164, %165 : vector<8x128xf32>
    %167 = vector.extract_strided_slice %160 {offsets = [0, 128], sizes = [8, 128], strides = [1, 1]} : vector<8x512xf32> to vector<8x128xf32>
    %168 = arith.negf %167 : vector<8x128xf32>
    %169 = math.exp %168 : vector<8x128xf32>
    %cst_51 = arith.constant 1.000000e+00 : f32
    %170 = vector.broadcast %cst_51 : f32 to vector<8x128xf32>
    %171 = arith.addf %170, %169 : vector<8x128xf32>
    %172 = arith.divf %170, %171 : vector<8x128xf32>
    %173 = vector.extract_strided_slice %160 {offsets = [0, 256], sizes = [8, 128], strides = [1, 1]} : vector<8x512xf32> to vector<8x128xf32>
    %174 = math.tanh %173 : vector<8x128xf32>
    %175 = vector.extract_strided_slice %160 {offsets = [0, 384], sizes = [8, 128], strides = [1, 1]} : vector<8x512xf32> to vector<8x128xf32>
    %176 = arith.negf %175 : vector<8x128xf32>
    %177 = math.exp %176 : vector<8x128xf32>
    %cst_52 = arith.constant 1.000000e+00 : f32
    %178 = vector.broadcast %cst_52 : f32 to vector<8x128xf32>
    %179 = arith.addf %178, %177 : vector<8x128xf32>
    %180 = arith.divf %178, %179 : vector<8x128xf32>
    %181 = arith.mulf %172, %146 : vector<8x128xf32>
    %182 = arith.mulf %166, %174 : vector<8x128xf32>
    %183 = arith.addf %181, %182 : vector<8x128xf32>
    %184 = math.tanh %183 : vector<8x128xf32>
    %185 = arith.mulf %180, %184 : vector<8x128xf32>
    %186 = arith.truncf %185 : vector<8x128xf32> to vector<8x128xbf16>
    %187 = arith.index_cast %c4_i32 : i32 to index
    %c0_53 = arith.constant 0 : index
    %c0_54 = arith.constant 0 : index
    %c0_55 = arith.constant 0 : index
    %188 = vector.load %arg4[%187, %c0_53, %c0_54, %c0_55] : memref<8x1x8x128xbf16, #tpu.memory_space<vmem>>, vector<1x1x8x128xbf16>
    %189 = vector.shape_cast %188 : vector<1x1x8x128xbf16> to vector<8x128xbf16>
    %190 = vector.shape_cast %186 : vector<8x128xbf16> to vector<1x1x8x128xbf16>
    tpu.vector_store %arg4[%187, %c0_53, %c0_54, %c0_55], %190 {strides = array<i32>} : memref<8x1x8x128xbf16, #tpu.memory_space<vmem>>, vector<1x1x8x128xbf16>,
    %c5_i32 = arith.constant 5 : i32
    %191 = arith.index_cast %c5_i32 : i32 to index
    %c0_56 = arith.constant 0 : index
    %c0_57 = arith.constant 0 : index
    %c0_58 = arith.constant 0 : index
    %192 = vector.load %arg2[%191, %c0_56, %c0_57, %c0_58] : memref<8x1x8x512xbf16, #tpu.memory_space<vmem>>, vector<1x1x8x512xbf16>
    %193 = vector.shape_cast %192 : vector<1x1x8x512xbf16> to vector<8x512xbf16>
    %194 = arith.extf %193 : vector<8x512xbf16> to vector<8x512xf32>
    %195 = arith.truncf %185 : vector<8x128xf32> to vector<8x128xbf16>
    %cst_59 = arith.constant dense<0.000000e+00> : vector<8x512xf32>
    %196 = tpu.matmul %195, %3, %cst_59 {dimension_numbers = #tpu.dot_dimension_numbers<[1], [0], [0], [1], [0, 0, 1, 1], [], []>} : vector<8x128xbf16>, vector<128x512xbf16>, vector<8x512xf32> -> vector<8x512xf32>
    %197 = arith.addf %194, %196 : vector<8x512xf32>
    %198 = vector.extract_strided_slice %197 {offsets = [0, 0], sizes = [8, 128], strides = [1, 1]} : vector<8x512xf32> to vector<8x128xf32>
    %199 = arith.negf %198 : vector<8x128xf32>
    %200 = math.exp %199 : vector<8x128xf32>
    %cst_60 = arith.constant 1.000000e+00 : f32
    %201 = vector.broadcast %cst_60 : f32 to vector<8x128xf32>
    %202 = arith.addf %201, %200 : vector<8x128xf32>
    %203 = arith.divf %201, %202 : vector<8x128xf32>
    %204 = vector.extract_strided_slice %197 {offsets = [0, 128], sizes = [8, 128], strides = [1, 1]} : vector<8x512xf32> to vector<8x128xf32>
    %205 = arith.negf %204 : vector<8x128xf32>
    %206 = math.exp %205 : vector<8x128xf32>
    %cst_61 = arith.constant 1.000000e+00 : f32
    %207 = vector.broadcast %cst_61 : f32 to vector<8x128xf32>
    %208 = arith.addf %207, %206 : vector<8x128xf32>
    %209 = arith.divf %207, %208 : vector<8x128xf32>
    %210 = vector.extract_strided_slice %197 {offsets = [0, 256], sizes = [8, 128], strides = [1, 1]} : vector<8x512xf32> to vector<8x128xf32>
    %211 = math.tanh %210 : vector<8x128xf32>
    %212 = vector.extract_strided_slice %197 {offsets = [0, 384], sizes = [8, 128], strides = [1, 1]} : vector<8x512xf32> to vector<8x128xf32>
    %213 = arith.negf %212 : vector<8x128xf32>
    %214 = math.exp %213 : vector<8x128xf32>
    %cst_62 = arith.constant 1.000000e+00 : f32
    %215 = vector.broadcast %cst_62 : f32 to vector<8x128xf32>
    %216 = arith.addf %215, %214 : vector<8x128xf32>
    %217 = arith.divf %215, %216 : vector<8x128xf32>
    %218 = arith.mulf %209, %183 : vector<8x128xf32>
    %219 = arith.mulf %203, %211 : vector<8x128xf32>
    %220 = arith.addf %218, %219 : vector<8x128xf32>
    %221 = math.tanh %220 : vector<8x128xf32>
    %222 = arith.mulf %217, %221 : vector<8x128xf32>
    %223 = arith.truncf %222 : vector<8x128xf32> to vector<8x128xbf16>
    %224 = arith.index_cast %c5_i32 : i32 to index
    %c0_63 = arith.constant 0 : index
    %c0_64 = arith.constant 0 : index
    %c0_65 = arith.constant 0 : index
    %225 = vector.load %arg4[%224, %c0_63, %c0_64, %c0_65] : memref<8x1x8x128xbf16, #tpu.memory_space<vmem>>, vector<1x1x8x128xbf16>
    %226 = vector.shape_cast %225 : vector<1x1x8x128xbf16> to vector<8x128xbf16>
    %227 = vector.shape_cast %223 : vector<8x128xbf16> to vector<1x1x8x128xbf16>
    tpu.vector_store %arg4[%224, %c0_63, %c0_64, %c0_65], %227 {strides = array<i32>} : memref<8x1x8x128xbf16, #tpu.memory_space<vmem>>, vector<1x1x8x128xbf16>,
    %c6_i32 = arith.constant 6 : i32
    %228 = arith.index_cast %c6_i32 : i32 to index
    %c0_66 = arith.constant 0 : index
    %c0_67 = arith.constant 0 : index
    %c0_68 = arith.constant 0 : index
    %229 = vector.load %arg2[%228, %c0_66, %c0_67, %c0_68] : memref<8x1x8x512xbf16, #tpu.memory_space<vmem>>, vector<1x1x8x512xbf16>
    %230 = vector.shape_cast %229 : vector<1x1x8x512xbf16> to vector<8x512xbf16>
    %231 = arith.extf %230 : vector<8x512xbf16> to vector<8x512xf32>
    %232 = arith.truncf %222 : vector<8x128xf32> to vector<8x128xbf16>
    %cst_69 = arith.constant dense<0.000000e+00> : vector<8x512xf32>
    %233 = tpu.matmul %232, %3, %cst_69 {dimension_numbers = #tpu.dot_dimension_numbers<[1], [0], [0], [1], [0, 0, 1, 1], [], []>} : vector<8x128xbf16>, vector<128x512xbf16>, vector<8x512xf32> -> vector<8x512xf32>
    %234 = arith.addf %231, %233 : vector<8x512xf32>
    %235 = vector.extract_strided_slice %234 {offsets = [0, 0], sizes = [8, 128], strides = [1, 1]} : vector<8x512xf32> to vector<8x128xf32>
    %236 = arith.negf %235 : vector<8x128xf32>
    %237 = math.exp %236 : vector<8x128xf32>
    %cst_70 = arith.constant 1.000000e+00 : f32
    %238 = vector.broadcast %cst_70 : f32 to vector<8x128xf32>
    %239 = arith.addf %238, %237 : vector<8x128xf32>
    %240 = arith.divf %238, %239 : vector<8x128xf32>
    %241 = vector.extract_strided_slice %234 {offsets = [0, 128], sizes = [8, 128], strides = [1, 1]} : vector<8x512xf32> to vector<8x128xf32>
    %242 = arith.negf %241 : vector<8x128xf32>
    %243 = math.exp %242 : vector<8x128xf32>
    %cst_71 = arith.constant 1.000000e+00 : f32
    %244 = vector.broadcast %cst_71 : f32 to vector<8x128xf32>
    %245 = arith.addf %244, %243 : vector<8x128xf32>
    %246 = arith.divf %244, %245 : vector<8x128xf32>
    %247 = vector.extract_strided_slice %234 {offsets = [0, 256], sizes = [8, 128], strides = [1, 1]} : vector<8x512xf32> to vector<8x128xf32>
    %248 = math.tanh %247 : vector<8x128xf32>
    %249 = vector.extract_strided_slice %234 {offsets = [0, 384], sizes = [8, 128], strides = [1, 1]} : vector<8x512xf32> to vector<8x128xf32>
    %250 = arith.negf %249 : vector<8x128xf32>
    %251 = math.exp %250 : vector<8x128xf32>
    %cst_72 = arith.constant 1.000000e+00 : f32
    %252 = vector.broadcast %cst_72 : f32 to vector<8x128xf32>
    %253 = arith.addf %252, %251 : vector<8x128xf32>
    %254 = arith.divf %252, %253 : vector<8x128xf32>
    %255 = arith.mulf %246, %220 : vector<8x128xf32>
    %256 = arith.mulf %240, %248 : vector<8x128xf32>
    %257 = arith.addf %255, %256 : vector<8x128xf32>
    %258 = math.tanh %257 : vector<8x128xf32>
    %259 = arith.mulf %254, %258 : vector<8x128xf32>
    %260 = arith.truncf %259 : vector<8x128xf32> to vector<8x128xbf16>
    %261 = arith.index_cast %c6_i32 : i32 to index
    %c0_73 = arith.constant 0 : index
    %c0_74 = arith.constant 0 : index
    %c0_75 = arith.constant 0 : index
    %262 = vector.load %arg4[%261, %c0_73, %c0_74, %c0_75] : memref<8x1x8x128xbf16, #tpu.memory_space<vmem>>, vector<1x1x8x128xbf16>
    %263 = vector.shape_cast %262 : vector<1x1x8x128xbf16> to vector<8x128xbf16>
    %264 = vector.shape_cast %260 : vector<8x128xbf16> to vector<1x1x8x128xbf16>
    tpu.vector_store %arg4[%261, %c0_73, %c0_74, %c0_75], %264 {strides = array<i32>} : memref<8x1x8x128xbf16, #tpu.memory_space<vmem>>, vector<1x1x8x128xbf16>,
    %c7_i32 = arith.constant 7 : i32
    %265 = arith.index_cast %c7_i32 : i32 to index
    %c0_76 = arith.constant 0 : index
    %c0_77 = arith.constant 0 : index
    %c0_78 = arith.constant 0 : index
    %266 = vector.load %arg2[%265, %c0_76, %c0_77, %c0_78] : memref<8x1x8x512xbf16, #tpu.memory_space<vmem>>, vector<1x1x8x512xbf16>
    %267 = vector.shape_cast %266 : vector<1x1x8x512xbf16> to vector<8x512xbf16>
    %268 = arith.extf %267 : vector<8x512xbf16> to vector<8x512xf32>
    %269 = arith.truncf %259 : vector<8x128xf32> to vector<8x128xbf16>
    %cst_79 = arith.constant dense<0.000000e+00> : vector<8x512xf32>
    %270 = tpu.matmul %269, %3, %cst_79 {dimension_numbers = #tpu.dot_dimension_numbers<[1], [0], [0], [1], [0, 0, 1, 1], [], []>} : vector<8x128xbf16>, vector<128x512xbf16>, vector<8x512xf32> -> vector<8x512xf32>
    %271 = arith.addf %268, %270 : vector<8x512xf32>
    %272 = vector.extract_strided_slice %271 {offsets = [0, 0], sizes = [8, 128], strides = [1, 1]} : vector<8x512xf32> to vector<8x128xf32>
    %273 = arith.negf %272 : vector<8x128xf32>
    %274 = math.exp %273 : vector<8x128xf32>
    %cst_80 = arith.constant 1.000000e+00 : f32
    %275 = vector.broadcast %cst_80 : f32 to vector<8x128xf32>
    %276 = arith.addf %275, %274 : vector<8x128xf32>
    %277 = arith.divf %275, %276 : vector<8x128xf32>
    %278 = vector.extract_strided_slice %271 {offsets = [0, 128], sizes = [8, 128], strides = [1, 1]} : vector<8x512xf32> to vector<8x128xf32>
    %279 = arith.negf %278 : vector<8x128xf32>
    %280 = math.exp %279 : vector<8x128xf32>
    %cst_81 = arith.constant 1.000000e+00 : f32
    %281 = vector.broadcast %cst_81 : f32 to vector<8x128xf32>
    %282 = arith.addf %281, %280 : vector<8x128xf32>
    %283 = arith.divf %281, %282 : vector<8x128xf32>
    %284 = vector.extract_strided_slice %271 {offsets = [0, 256], sizes = [8, 128], strides = [1, 1]} : vector<8x512xf32> to vector<8x128xf32>
    %285 = math.tanh %284 : vector<8x128xf32>
    %286 = vector.extract_strided_slice %271 {offsets = [0, 384], sizes = [8, 128], strides = [1, 1]} : vector<8x512xf32> to vector<8x128xf32>
    %287 = arith.negf %286 : vector<8x128xf32>
    %288 = math.exp %287 : vector<8x128xf32>
    %cst_82 = arith.constant 1.000000e+00 : f32
    %289 = vector.broadcast %cst_82 : f32 to vector<8x128xf32>
    %290 = arith.addf %289, %288 : vector<8x128xf32>
    %291 = arith.divf %289, %290 : vector<8x128xf32>
    %292 = arith.mulf %283, %257 : vector<8x128xf32>
    %293 = arith.mulf %277, %285 : vector<8x128xf32>
    %294 = arith.addf %292, %293 : vector<8x128xf32>
    %295 = math.tanh %294 : vector<8x128xf32>
    %296 = arith.mulf %291, %295 : vector<8x128xf32>
    %297 = arith.truncf %296 : vector<8x128xf32> to vector<8x128xbf16>
    %298 = arith.index_cast %c7_i32 : i32 to index
    %c0_83 = arith.constant 0 : index
    %c0_84 = arith.constant 0 : index
    %c0_85 = arith.constant 0 : index
    %299 = vector.load %arg4[%298, %c0_83, %c0_84, %c0_85] : memref<8x1x8x128xbf16, #tpu.memory_space<vmem>>, vector<1x1x8x128xbf16>
    %300 = vector.shape_cast %299 : vector<1x1x8x128xbf16> to vector<8x128xbf16>
    %301 = vector.shape_cast %297 : vector<8x128xbf16> to vector<1x1x8x128xbf16>
    tpu.vector_store %arg4[%298, %c0_83, %c0_84, %c0_85], %301 {strides = array<i32>} : memref<8x1x8x128xbf16, #tpu.memory_space<vmem>>, vector<1x1x8x128xbf16>,
    %c8_i32 = arith.constant 8 : i32
    %c0_86 = arith.constant 0 : index
    %c0_87 = arith.constant 0 : index
    %302 = vector.load %arg7[%c0_86, %c0_87] : memref<8x128xf32, #tpu.memory_space<vmem>>, vector<8x128xf32>
    tpu.vector_store %arg7[%c0_86, %c0_87], %296 {strides = array<i32>} : memref<8x128xf32, #tpu.memory_space<vmem>>, vector<8x128xf32>,
    %c0_88 = arith.constant 0 : index
    %c0_89 = arith.constant 0 : index
    %303 = vector.load %arg8[%c0_88, %c0_89] : memref<8x128xf32, #tpu.memory_space<vmem>>, vector<8x128xf32>
    tpu.vector_store %arg8[%c0_88, %c0_89], %294 {strides = array<i32>} : memref<8x128xf32, #tpu.memory_space<vmem>>, vector<8x128xf32>,
    %c0_i32_90 = arith.constant 0 : i32
    %304 = arith.cmpi eq, %arg1, %c0_i32_90 : i32
    %305 = arith.extui %304 : i1 to i32
    %c0_i32_91 = arith.constant 0 : i32
    %306 = arith.cmpi ne, %305, %c0_i32_91 : i32
    scf.if %306 {
      %c0_92 = arith.constant 0 : index
      %c0_93 = arith.constant 0 : index
      %c0_94 = arith.constant 0 : index
      %307 = vector.load %arg5[%c0_92, %c0_93, %c0_94] : memref<1x8x128xf32, #tpu.memory_space<vmem>>, vector<1x8x128xf32>
      %308 = vector.shape_cast %307 : vector<1x8x128xf32> to vector<8x128xf32>
      %309 = vector.shape_cast %296 : vector<8x128xf32> to vector<1x8x128xf32>
      tpu.vector_store %arg5[%c0_92, %c0_93, %c0_94], %309 {strides = array<i32>} : memref<1x8x128xf32, #tpu.memory_space<vmem>>, vector<1x8x128xf32>,
      %c0_95 = arith.constant 0 : index
      %c0_96 = arith.constant 0 : index
      %c0_97 = arith.constant 0 : index
      %310 = vector.load %arg6[%c0_95, %c0_96, %c0_97] : memref<1x8x128xf32, #tpu.memory_space<vmem>>, vector<1x8x128xf32>
      %311 = vector.shape_cast %310 : vector<1x8x128xf32> to vector<8x128xf32>
      %312 = vector.shape_cast %294 : vector<8x128xf32> to vector<1x8x128xf32>
      tpu.vector_store %arg6[%c0_95, %c0_96, %c0_97], %312 {strides = array<i32>} : memref<1x8x128xf32, #tpu.memory_space<vmem>>, vector<1x8x128xf32>,
    } else {
    }
    return
  }
  func.func @transform_0(%arg0: i32, %arg1: i32) -> (i32, i32, i32, i32) {
    %c0_i32 = arith.constant 0 : i32
    %c0_i32_0 = arith.constant 0 : i32
    %c0_i32_1 = arith.constant 0 : i32
    return %arg1, %arg0, %c0_i32, %c0_i32_0 : i32, i32, i32, i32
  }
  func.func @transform_1(%arg0: i32, %arg1: i32) -> (i32, i32) {
    %c0_i32 = arith.constant 0 : i32
    %c0_i32_0 = arith.constant 0 : i32
    %c0_i32_1 = arith.constant 0 : i32
    return %c0_i32, %c0_i32_0 : i32, i32
  }
  func.func @transform_2(%arg0: i32, %arg1: i32) -> (i32, i32, i32, i32) {
    %c0_i32 = arith.constant 0 : i32
    %c0_i32_0 = arith.constant 0 : i32
    %c0_i32_1 = arith.constant 0 : i32
    return %arg1, %arg0, %c0_i32, %c0_i32_0 : i32, i32, i32, i32
  }
  func.func @transform_3(%arg0: i32, %arg1: i32) -> (i32, i32, i32) {
    %c0_i32 = arith.constant 0 : i32
    %c0_i32_0 = arith.constant 0 : i32
    %c0_i32_1 = arith.constant 0 : i32
    return %arg0, %c0_i32, %c0_i32_0 : i32, i32, i32
  }
  func.func @transform_4(%arg0: i32, %arg1: i32) -> (i32, i32, i32) {
    %c0_i32 = arith.constant 0 : i32
    %c0_i32_0 = arith.constant 0 : i32
    %c0_i32_1 = arith.constant 0 : i32
    return %arg0, %c0_i32, %c0_i32_0 : i32, i32, i32
  }
}

</mosaic_0001>

<bundles_post_ra>
// kernel: tpu_custom_call.1
= control target key start
LH: loop header
LB: loop body
LE: loop exit
PB: predicated region body
PF: predicated region fallthrough
CT: control target
= control target key end

     0   :  { %10 = vsyncpa [#allocation5], 0  ;;  %s2087_s0 = inlined_call_operand.hbm [shape: bf16[8,1,8,512], index: 0, kind: input, shape index: {}]   ;;  %s2088_s1 = inlined_call_operand.hbm [shape: bf16[128,512], index: 1, kind: input, shape index: {}]   ;;  %s2089_s2 = inlined_call_operand.hbm [shape: bf16[8,1,8,128], index: 2, kind: output, shape index: {0}]   ;;  %s2090_s3 = inlined_call_operand.hbm [shape: f32[1,8,128], index: 3, kind: output, shape index: {1}]   ;;  %s2091_s4 = inlined_call_operand.hbm [shape: f32[1,8,128], index: 4, kind: output, shape index: {2}]  }
   0x1   :  { %11 = vsyncpa [#allocation8], 0 }
   0x2   :  { %12 = vsyncpa [#allocation6], 0 }
   0x3   :  { %13 = vsyncpa [#allocation11], 0  ;;  %s1649_s15 = smov [#allocation4]   ;;  %s1531_s19 = scalar_lea.hbm %s2087_s0, 2048 }
   0x4   :  { %s19_s16 = sshll.u32 %s1649_s15, 4  ;;  %p1532_p0 = scmp.ne.s32.totalorder %s2087_s0, %s1531_s19  ;;  %s20_s16 = int_to_ptr.vmem [resolvable:$true] %s19_s16 }
   0x5   :  { %p1535_p1 = scmp.lt.u32.totalorder %s1531_s19, %s2087_s0 }
   0x7   :  { %p1537_p2 = pnand %p1535_p1, %p1532_p0 }
   0x9   :  { %1540 = shalt.err (!%p1537_p2)
}
   0xa   :  { %s1541_s24 = scalar_lea.vmem %s20_s16, 2048  ;;  %p1546_p4 = scmp.lt.s32.totalorder %s20_s16, %s20_s16 }
   0xb   :  { %p1542_p3 = scmp.ne.s32.totalorder %s20_s16, %s1541_s24  ;;  %p1547_p5 = scmp.lt.s32.totalorder %s1541_s24, %s1541_s24 }
   0xd   :  { %p1548_p6 = por %p1547_p5, %p1546_p4 }
   0xf   :  { %p1549_p7 = pnand %p1548_p6, %p1542_p3 }
  0x11   :  { %1552 = shalt.err (!%p1549_p7)
}
  0x12   :  { %s1650_s25 = smov 256   ;;  %s1651_s26 = smov 16  }
  0x13   :  { %25 = dma.hbm_to_vmem [thread:$0]  %s2087_s0, 2048, %s20_s16, [#allocation5], %s1650_s25, %s1650_s25, %s1651_s26  }
  0x14   :  { %s1652_s29 = smov [#allocation7]   ;;  %s1553_s7 = scalar_lea.hbm %s2088_s1, 4096 }
  0x15   :  { %s31_s30 = sshll.u32 %s1652_s29, 4  ;;  %p1554_p8 = scmp.ne.s32.totalorder %s2088_s1, %s1553_s7  ;;  %s32_s30 = int_to_ptr.vmem [resolvable:$true] %s31_s30 }
  0x16   :  { %p1557_p9 = scmp.lt.u32.totalorder %s1553_s7, %s2088_s1 }
  0x18   :  { %p1559_p10 = pnand %p1557_p9, %p1554_p8 }
  0x1a   :  { %1562 = shalt.err (!%p1559_p10)
}
  0x1b   :  { %s1563_s12 = scalar_lea.vmem %s32_s30, 4096  ;;  %p1568_p12 = scmp.lt.s32.totalorder %s32_s30, %s32_s30 }
  0x1c   :  { %p1564_p11 = scmp.ne.s32.totalorder %s32_s30, %s1563_s12  ;;  %p1569_p13 = scmp.lt.s32.totalorder %s1563_s12, %s1563_s12 }
  0x1e   :  { %p1570_p0 = por %p1569_p13, %p1568_p12 }
  0x20   :  { %p1571_p1 = pnand %p1570_p0, %p1564_p11 }
  0x22   :  { %1574 = shalt.err (!%p1571_p1)
}
  0x23   :  { %37 = dma.hbm_to_vmem [thread:$0]  %s2088_s1, 4096, %s32_s30, [#allocation8], %s1650_s25, %s1650_s25, %s1651_s26  }
  0x24   :  { %1641 = dma.done.wait [#allocation5], 2048  }
  0x25   :  { %1642 = vsyncadd [#allocation5], 4294965248 }
  0x26   :  { %1643 = dma.done.wait [#allocation8], 4096  }
  0x27   :  { %1644 = vsyncadd [#allocation8], 4294963200  ;;  %v1653_v0 = vmov 0   ;;  %v1711_v1 = vld [vmem:[#allocation7 + $0x4] ss:$16 sps:$4 sm:$0xff]   ;;  %v1654_v33 = vmov 0.0|0.0  }
  0x28   :  { %284 = vmatprep.mubr.bf16.mxu0 %v1653_v0  ;;  %325 = vmatprep.mubr.bf16.mxu1 %v1653_v0  ;;  %v1713_v2 = vld [vmem:[#allocation7] ss:$16 sps:$4 sm:$0xff]   ;;  %v1716_v3 = vld [vmem:[#allocation7 + $0x24] ss:$16 sps:$4 sm:$0xff]   ;;  %v1724_v6 = vld [vmem:[#allocation7 + $0xc] ss:$16 sps:$4 sm:$0xff]  }
  0x29   :  { %252 = vmatprep.subr.bf16.mxu0 %v1711_v1  ;;  %v1719_v4 = vld [vmem:[#allocation7 + $0x20] ss:$16 sps:$4 sm:$0xff]   ;;  %v1722_v5 = vld [vmem:[#allocation7 + $0x44] ss:$16 sps:$4 sm:$0xff]   ;;  %v1726_v7 = vld [vmem:[#allocation7 + $0x8] ss:$16 sps:$4 sm:$0xff]   ;;  %293 = vmatprep.subr.bf16.mxu1 %v1724_v6 }
  0x2a   :  { %253 = vmatpush1.bf16.msra.mxu0 %v1713_v2  ;;  %v1729_v8 = vld [vmem:[#allocation7 + $0x40] ss:$16 sps:$4 sm:$0xff]   ;;  %v1733_v9 = vld [vmem:[#allocation7 + $0x64] ss:$16 sps:$4 sm:$0xff]   ;;  %294 = vmatpush1.bf16.msra.mxu1 %v1726_v7  ;;  %v1736_v10 = vld [vmem:[#allocation7 + $0x2c] ss:$16 sps:$4 sm:$0xff]  }
  0x2b   :  { %254 = vmatprep.subr.bf16.mxu0 %v1716_v3  ;;  %v1738_v11 = vld [vmem:[#allocation7 + $0x28] ss:$16 sps:$4 sm:$0xff]   ;;  %295 = vmatprep.subr.bf16.mxu1 %v1736_v10  ;;  %v1742_v12 = vld [vmem:[#allocation7 + $0x60] ss:$16 sps:$4 sm:$0xff]   ;;  %v1744_v13 = vld [vmem:[#allocation7 + $0x84] ss:$16 sps:$4 sm:$0xff]  }
  0x2c   :  { %v1746_v14 = vld [vmem:[#allocation7 + $0x4c] ss:$16 sps:$4 sm:$0xff]   ;;  %v1750_v15 = vld [vmem:[#allocation7 + $0x48] ss:$16 sps:$4 sm:$0xff]   ;;  %v1756_v17 = vld [vmem:[#allocation7 + $0x80] ss:$16 sps:$4 sm:$0xff]  }
  0x2d   :  { %v1753_v16 = vld [vmem:[#allocation7 + $0x6c] ss:$16 sps:$4 sm:$0xff]   ;;  %v1759_v18 = vld [vmem:[#allocation7 + $0xa4] ss:$16 sps:$4 sm:$0xff]   ;;  %v1762_v19 = vld [vmem:[#allocation7 + $0x68] ss:$16 sps:$4 sm:$0xff]  }
  0x2e   :  { %255 = vmatpush1.bf16.msra.mxu0 %v1719_v4  ;;  %296 = vmatpush1.bf16.msra.mxu1 %v1738_v11  ;;  %v1765_v20 = vld [vmem:[#allocation7 + $0x8c] ss:$16 sps:$4 sm:$0xff]   ;;  %v1768_v21 = vld [vmem:[#allocation7 + $0xa0] ss:$16 sps:$4 sm:$0xff]   ;;  %v1770_v22 = vld [vmem:[#allocation7 + $0xc4] ss:$16 sps:$4 sm:$0xff]  }
  0x2f   :  { %256 = vmatprep.subr.bf16.mxu0 %v1722_v5  ;;  %297 = vmatprep.subr.bf16.mxu1 %v1746_v14  ;;  %v1774_v23 = vld [vmem:[#allocation7 + $0x88] ss:$16 sps:$4 sm:$0xff]   ;;  %v1777_v24 = vld [vmem:[#allocation7 + $0xac] ss:$16 sps:$4 sm:$0xff]   ;;  %v1780_v25 = vld [vmem:[#allocation7 + $0xc0] ss:$16 sps:$4 sm:$0xff]  }
  0x30   :  { %v1783_v26 = vld [vmem:[#allocation7 + $0xe4] ss:$16 sps:$4 sm:$0xff]   ;;  %v1786_v27 = vld [vmem:[#allocation7 + $0xa8] ss:$16 sps:$4 sm:$0xff]   ;;  %v1789_v28 = vld [vmem:[#allocation7 + $0xcc] ss:$16 sps:$4 sm:$0xff]  }
  0x31   :  { %v1792_v29 = vld [vmem:[#allocation7 + $0xe0] ss:$16 sps:$4 sm:$0xff]   ;;  %v1796_v30 = vld [vmem:[#allocation7 + $0xc8] ss:$16 sps:$4 sm:$0xff]   ;;  %v1799_v31 = vld [vmem:[#allocation7 + $0xec] ss:$16 sps:$4 sm:$0xff]  }
  0x32   :  { %257 = vmatpush1.bf16.msra.mxu0 %v1729_v8  ;;  %298 = vmatpush1.bf16.msra.mxu1 %v1750_v15  ;;  %v1803_v32 = vld [vmem:[#allocation7 + $0xe8] ss:$16 sps:$4 sm:$0xff]   ;;  %v85_v34 = vld [vmem:[#allocation4] sm:$0xff]  ;;  %s1655_s1 = smov [#allocation10]   ;;  %s1656_s15 = smov [#allocation9]  }
  0x33   :  { %258 = vmatprep.subr.bf16.mxu0 %v1733_v9  ;;  %299 = vmatprep.subr.bf16.mxu1 %v1753_v16  ;;  %v87_v35 = vunpack.c.l.bf16 %v85_v34  ;;  %v88_v36 = vunpack.c.h.bf16 %v85_v34  ;;  %v86_v38 = vld [vmem:[#allocation4 + $0x8] sm:$0xff]  ;;  %s1229_s14 = sshll.u32 %s1655_s1, 4  ;;  %s1216_s16 = sshll.u32 %s1656_s15, 4  ;;  %s1230_s14 = int_to_ptr.vmem [resolvable:$true] %s1229_s14  ;;  %s2037_s16 = int_to_ptr.vmem [resolvable:$true] %s1216_s16 }
  0x34   :  { %v90_v45 = vunpack.c.h.bf16 %v86_v38  ;;  %v89_v51 = vunpack.c.l.bf16 %v86_v38  ;;  %s1657_s17 = smov [#allocation12]   ;;  %s1575_s19 = scalar_lea.vmem %s1230_s14, 128 }
  0x35   :  { %s1239_s18 = sshll.u32 %s1657_s17, 4  ;;  %p1576_p2 = scmp.ne.s32.totalorder %s1230_s14, %s1575_s19  ;;  %s2039_s18 = int_to_ptr.vmem [resolvable:$true] %s1239_s18 }
  0x36   :  { %259 = vmatpush1.bf16.msra.mxu0 %v1742_v12  ;;  %300 = vmatpush1.bf16.msra.mxu1 %v1762_v19  ;;  %p1580_p3 = scmp.lt.s32.totalorder %s1230_s14, %s1230_s14  ;;  %p1581_p4 = scmp.lt.s32.totalorder %s1575_s19, %s1575_s19 }
  0x37   :  { %260 = vmatprep.subr.bf16.mxu0 %v1744_v13  ;;  %301 = vmatprep.subr.bf16.mxu1 %v1765_v20 }
  0x38   :  { %p1582_p5 = por %p1581_p4, %p1580_p3 }
  0x3a   :  { %261 = vmatpush1.bf16.msra.mxu0 %v1756_v17  ;;  %302 = vmatpush1.bf16.msra.mxu1 %v1774_v23  ;;  %p1583_p6 = pnand %p1582_p5, %p1576_p2 }
  0x3b   :  { %262 = vmatprep.subr.bf16.mxu0 %v1759_v18  ;;  %303 = vmatprep.subr.bf16.mxu1 %v1777_v24 }
  0x3e   :  { %263 = vmatpush1.bf16.msra.mxu0 %v1768_v21  ;;  %304 = vmatpush1.bf16.msra.mxu1 %v1786_v27 }
  0x3f   :  { %264 = vmatprep.subr.bf16.mxu0 %v1770_v22  ;;  %305 = vmatprep.subr.bf16.mxu1 %v1789_v28 }
  0x42   :  { %265 = vmatpush1.bf16.msra.mxu0 %v1780_v25  ;;  %306 = vmatpush1.bf16.msra.mxu1 %v1796_v30 }
  0x43   :  { %266 = vmatprep.subr.bf16.mxu0 %v1783_v26  ;;  %307 = vmatprep.subr.bf16.mxu1 %v1799_v31 }
  0x46   :  { %267 = vmatpush1.bf16.msra.mxu0 %v1792_v29  ;;  %308 = vmatpush1.bf16.msra.mxu1 %v1803_v32 }
  0x47   :  { %371 = vmatprep.subr.bf16.mxu0 %v1711_v1  ;;  %412 = vmatprep.subr.bf16.mxu1 %v1724_v6 }
  0x49   :  { %285 = vmatmul.mubr.bf16.vlgmr.msra.gmra.mrb[0].mxu0 %v1654_v33  ;;  %326 = vmatmul.mubr.bf16.vlgmr.msra.gmra.mrb[0].mxu1 %v1654_v33 }
  0x4a   :  { %372 = vmatpush1.bf16.msra.mxu0 %v1713_v2  ;;  %403 = vmatprep.mubr.bf16.mxu0 %v1653_v0 }
  0x4b   :  { %373 = vmatprep.subr.bf16.mxu0 %v1716_v3  ;;  %413 = vmatpush1.bf16.msra.mxu1 %v1726_v7 }
  0x4c   :  { %414 = vmatprep.subr.bf16.mxu1 %v1736_v10  ;;  %444 = vmatprep.mubr.bf16.mxu1 %v1653_v0 }
  0x4e   :  { %374 = vmatpush1.bf16.msra.mxu0 %v1719_v4 }
  0x4f   :  { %375 = vmatprep.subr.bf16.mxu0 %v1722_v5  ;;  %415 = vmatpush1.bf16.msra.mxu1 %v1738_v11 }
  0x50   :  { %416 = vmatprep.subr.bf16.mxu1 %v1746_v14 }
  0x52   :  { %376 = vmatpush1.bf16.msra.mxu0 %v1729_v8 }
  0x53   :  { %377 = vmatprep.subr.bf16.mxu0 %v1733_v9  ;;  %417 = vmatpush1.bf16.msra.mxu1 %v1750_v15 }
  0x54   :  { %418 = vmatprep.subr.bf16.mxu1 %v1753_v16 }
  0x56   :  { %378 = vmatpush1.bf16.msra.mxu0 %v1742_v12 }
  0x57   :  { %379 = vmatprep.subr.bf16.mxu0 %v1744_v13  ;;  %419 = vmatpush1.bf16.msra.mxu1 %v1762_v19 }
  0x58   :  { %420 = vmatprep.subr.bf16.mxu1 %v1765_v20 }
  0x5a   :  { %380 = vmatpush1.bf16.msra.mxu0 %v1756_v17 }
  0x5b   :  { %381 = vmatprep.subr.bf16.mxu0 %v1759_v18  ;;  %421 = vmatpush1.bf16.msra.mxu1 %v1774_v23 }
  0x5c   :  { %422 = vmatprep.subr.bf16.mxu1 %v1777_v24 }
  0x5e   :  { %382 = vmatpush1.bf16.msra.mxu0 %v1768_v21 }
  0x5f   :  { %383 = vmatprep.subr.bf16.mxu0 %v1770_v22  ;;  %423 = vmatpush1.bf16.msra.mxu1 %v1786_v27 }
  0x60   :  { %424 = vmatprep.subr.bf16.mxu1 %v1789_v28 }
  0x62   :  { %384 = vmatpush1.bf16.msra.mxu0 %v1780_v25 }
  0x63   :  { %385 = vmatprep.subr.bf16.mxu0 %v1783_v26  ;;  %425 = vmatpush1.bf16.msra.mxu1 %v1796_v30 }
  0x64   :  { %426 = vmatprep.subr.bf16.mxu1 %v1799_v31 }
  0x66   :  { %386 = vmatpush1.bf16.msra.mxu0 %v1792_v29 }
  0x67   :  { %491 = vmatprep.subr.bf16.mxu0 %v1711_v1  ;;  %427 = vmatpush1.bf16.msra.mxu1 %v1803_v32 }
  0x68   :  { %532 = vmatprep.subr.bf16.mxu1 %v1724_v6 }
 0x11c   :  { %v286_v37 = vpop.f32.mrb[0].mxu0  ;;  %v327_v47 = vpop.f32.mrb[0].mxu1 }
 0x11d   :  { %v334_v39 = vadd.f32 %v286_v37, %v87_v35  ;;  %v288_v40 = vpop.f32.mrb[1].mxu0  ;;  %v329_v48 = vpop.f32.mrb[1].mxu1  ;;  %v336_v54 = vadd.f32 %v327_v47, %v89_v51 }
 0x11e   :  { %v335_v41 = vadd.f32 %v288_v40, %v88_v36  ;;  %v290_v42 = vpop.f32.mrb[2].mxu0  ;;  %v337_v49 = vadd.f32 %v329_v48, %v90_v45  ;;  %v331_v50 = vpop.f32.mrb[2].mxu1  ;;  %v365_v40 = vld [vmem:[#allocation4 + $0x10] sm:$0xff] }
 0x11f   :  { %v1288_v43 = vmul.f32 -1.442695, %v334_v39  ;;  %v291_v44 = vpop.f32.mrb[3].mxu0  ;;  %v332_v52 = vpop.f32.mrb[3].mxu1  ;;  %v368_v42 = vunpack.c.h.bf16 %v365_v40 }
 0x120   :  { %v1289_v46 = vmul.f32 -1.442695, %v335_v41  ;;  %v1290_v53 = vmul.f32 -1.442695, %v337_v49  ;;  %v367_v41 = vunpack.c.l.bf16 %v365_v40 }
 0x121   :  { %1371 = vpow2.f32 %v1288_v43 }
 0x122   :  { %1373 = vpow2.f32 %v1289_v46  ;;  %v366_v46 = vld [vmem:[#allocation4 + $0x18] sm:$0xff] }
 0x123   :  { %1375 = vpow2.f32 %v1290_v53 }
 0x124   :  { %1377 = vtanh.f32 %v336_v54 }
 0x12b   :  { %v1372_v55 = vpop.eup %1371 }
 0x12c   :  { %v1374_v56 = vpop.eup %1373  ;;  %v341_v57 = vadd.f32 1.0, %v1372_v55 }
 0x12d   :  { %v347_v58 = vadd.f32 1.0, %v1374_v56  ;;  %v1376_v59 = vpop.eup %1375  ;;  %v370_v56 = vunpack.c.h.bf16 %v366_v46 }
 0x12e   :  { %1379 = vrcp.f32 %v341_v57  ;;  %v1378_v60 = vpop.eup %1377  ;;  %v354_v62 = vadd.f32 1.0, %v1376_v59 }
 0x12f   :  { %1381 = vrcp.f32 %v347_v58  ;;  %v369_v58 = vunpack.c.l.bf16 %v366_v46 }
 0x130   :  { %1383 = vrcp.f32 %v354_v62 }
 0x138   :  { %v1380_v61 = vpop.eup %1379 }
 0x139   :  { %v1382_v63 = vpop.eup %1381  ;;  %v358_v33 = vmul.f32 %v1380_v61, %v1378_v60 }
 0x13a   :  { %v357_v34 = vmul.f32 0.0, %v1382_v63  ;;  %v1384_v36 = vpop.eup %1383 }
 0x13c   :  { %v1843_v35 = vadd.f32 %v358_v33, %v357_v34 }
 0x13e   :  { %1385 = vtanh.f32 %v1843_v35 }
 0x148   :  { %v1386_v37 = vpop.eup %1385 }
 0x149   :  { %v361_v38 = vmul.f32 %v1386_v37, %v1384_v36 }
 0x14b   :  { %v362_v39 = vpack.c.bf16 %v361_v38, %v361_v38 }
 0x14d   :  { %363 = vst [vmem:[#allocation9] sm:$0xf] %v362_v39  ;;  %404 = vmatmul.mubr.bf16.vlgmr.msra.gmra.mrb[4].mxu0 %v362_v39  ;;  %445 = vmatmul.mubr.bf16.vlgmr.msra.gmra.mrb[4].mxu1 %v362_v39 }
 0x14e   :  { %492 = vmatpush1.bf16.msra.mxu0 %v1713_v2  ;;  %533 = vmatpush1.bf16.msra.mxu1 %v1726_v7 }
 0x14f   :  { %493 = vmatprep.subr.bf16.mxu0 %v1716_v3  ;;  %534 = vmatprep.subr.bf16.mxu1 %v1736_v10 }
 0x150   :  { %523 = vmatprep.mubr.bf16.mxu0 %v1653_v0  ;;  %564 = vmatprep.mubr.bf16.mxu1 %v1653_v0 }
 0x152   :  { %494 = vmatpush1.bf16.msra.mxu0 %v1719_v4  ;;  %535 = vmatpush1.bf16.msra.mxu1 %v1738_v11 }
 0x153   :  { %495 = vmatprep.subr.bf16.mxu0 %v1722_v5  ;;  %536 = vmatprep.subr.bf16.mxu1 %v1746_v14 }
 0x156   :  { %496 = vmatpush1.bf16.msra.mxu0 %v1729_v8  ;;  %537 = vmatpush1.bf16.msra.mxu1 %v1750_v15 }
 0x157   :  { %497 = vmatprep.subr.bf16.mxu0 %v1733_v9  ;;  %538 = vmatprep.subr.bf16.mxu1 %v1753_v16 }
 0x15a   :  { %498 = vmatpush1.bf16.msra.mxu0 %v1742_v12  ;;  %539 = vmatpush1.bf16.msra.mxu1 %v1762_v19 }
 0x15b   :  { %499 = vmatprep.subr.bf16.mxu0 %v1744_v13  ;;  %540 = vmatprep.subr.bf16.mxu1 %v1765_v20 }
 0x15e   :  { %500 = vmatpush1.bf16.msra.mxu0 %v1756_v17  ;;  %541 = vmatpush1.bf16.msra.mxu1 %v1774_v23 }
 0x15f   :  { %501 = vmatprep.subr.bf16.mxu0 %v1759_v18  ;;  %542 = vmatprep.subr.bf16.mxu1 %v1777_v24 }
 0x162   :  { %502 = vmatpush1.bf16.msra.mxu0 %v1768_v21  ;;  %543 = vmatpush1.bf16.msra.mxu1 %v1786_v27 }
 0x163   :  { %503 = vmatprep.subr.bf16.mxu0 %v1770_v22  ;;  %544 = vmatprep.subr.bf16.mxu1 %v1789_v28 }
 0x166   :  { %504 = vmatpush1.bf16.msra.mxu0 %v1780_v25  ;;  %545 = vmatpush1.bf16.msra.mxu1 %v1796_v30 }
 0x167   :  { %505 = vmatprep.subr.bf16.mxu0 %v1783_v26  ;;  %546 = vmatprep.subr.bf16.mxu1 %v1799_v31 }
 0x16a   :  { %506 = vmatpush1.bf16.msra.mxu0 %v1792_v29  ;;  %547 = vmatpush1.bf16.msra.mxu1 %v1803_v32 }
 0x16b   :  { %611 = vmatprep.subr.bf16.mxu0 %v1711_v1  ;;  %652 = vmatprep.subr.bf16.mxu1 %v1724_v6 }
 0x220   :  { %v405_v43 = vpop.f32.mrb[4].mxu0  ;;  %v446_v44 = vpop.f32.mrb[4].mxu1 }
 0x221   :  { %v453_v45 = vadd.f32 %v405_v43, %v367_v41  ;;  %v407_v47 = vpop.f32.mrb[5].mxu0  ;;  %v448_v48 = vpop.f32.mrb[5].mxu1  ;;  %v455_v60 = vadd.f32 %v446_v44, %v369_v58 }
 0x222   :  { %v454_v49 = vadd.f32 %v407_v47, %v368_v42  ;;  %v409_v50 = vpop.f32.mrb[6].mxu0  ;;  %v450_v51 = vpop.f32.mrb[6].mxu1  ;;  %v456_v57 = vadd.f32 %v448_v48, %v370_v56 }
 0x223   :  { %v1291_v52 = vmul.f32 -1.442695, %v453_v45  ;;  %v410_v53 = vpop.f32.mrb[7].mxu0  ;;  %v451_v54 = vpop.f32.mrb[7].mxu1 }
 0x224   :  { %v1292_v55 = vmul.f32 -1.442695, %v454_v49  ;;  %v1293_v59 = vmul.f32 -1.442695, %v456_v57 }
 0x225   :  { %1387 = vpow2.f32 %v1291_v52  ;;  %v486_v52 = vld [vmem:[#allocation4 + $0x28] sm:$0xff] }
 0x226   :  { %1389 = vpow2.f32 %v1292_v55 }
 0x227   :  { %1391 = vpow2.f32 %v1293_v59 }
 0x228   :  { %1393 = vtanh.f32 %v455_v60 }
 0x22f   :  { %v1388_v61 = vpop.eup %1387 }
 0x230   :  { %v1390_v62 = vpop.eup %1389  ;;  %v460_v63 = vadd.f32 1.0, %v1388_v61 }
 0x231   :  { %v466_v33 = vadd.f32 1.0, %v1390_v62  ;;  %v1392_v34 = vpop.eup %1391  ;;  %v490_v62 = vunpack.c.h.bf16 %v486_v52 }
 0x232   :  { %1395 = vrcp.f32 %v460_v63  ;;  %v1394_v36 = vpop.eup %1393  ;;  %v473_v40 = vadd.f32 1.0, %v1392_v34 }
 0x233   :  { %1397 = vrcp.f32 %v466_v33  ;;  %v489_v33 = vunpack.c.l.bf16 %v486_v52 }
 0x234   :  { %1399 = vrcp.f32 %v473_v40 }
 0x23c   :  { %v1396_v37 = vpop.eup %1395 }
 0x23d   :  { %v1398_v38 = vpop.eup %1397  ;;  %v477_v39 = vmul.f32 %v1396_v37, %v1394_v36 }
 0x23e   :  { %v476_v41 = vmul.f32 %v1398_v38, %v1843_v35  ;;  %v1400_v43 = vpop.eup %1399  ;;  %v485_v35 = vld [vmem:[#allocation4 + $0x20] sm:$0xff] }
 0x23f   :  { %v487_v47 = vunpack.c.l.bf16 %v485_v35  ;;  %v488_v48 = vunpack.c.h.bf16 %v485_v35 }
 0x240   :  { %v1881_v42 = vadd.f32 %v477_v39, %v476_v41 }
 0x242   :  { %1401 = vtanh.f32 %v1881_v42 }
 0x24c   :  { %v1402_v44 = vpop.eup %1401 }
 0x24d   :  { %v480_v45 = vmul.f32 %v1402_v44, %v1400_v43 }
 0x24f   :  { %v481_v46 = vpack.c.bf16 %v480_v45, %v480_v45 }
 0x251   :  { %483 = vst [vmem:[#allocation9 + $0x4] sm:$0xf] %v481_v46  ;;  %524 = vmatmul.mubr.bf16.vlgmr.msra.gmra.mrb[8].mxu0 %v481_v46  ;;  %565 = vmatmul.mubr.bf16.vlgmr.msra.gmra.mrb[8].mxu1 %v481_v46 }
 0x252   :  { %612 = vmatpush1.bf16.msra.mxu0 %v1713_v2  ;;  %653 = vmatpush1.bf16.msra.mxu1 %v1726_v7 }
 0x253   :  { %613 = vmatprep.subr.bf16.mxu0 %v1716_v3  ;;  %654 = vmatprep.subr.bf16.mxu1 %v1736_v10 }
 0x254   :  { %643 = vmatprep.mubr.bf16.mxu0 %v1653_v0  ;;  %684 = vmatprep.mubr.bf16.mxu1 %v1653_v0 }
 0x256   :  { %614 = vmatpush1.bf16.msra.mxu0 %v1719_v4  ;;  %655 = vmatpush1.bf16.msra.mxu1 %v1738_v11 }
 0x257   :  { %615 = vmatprep.subr.bf16.mxu0 %v1722_v5  ;;  %656 = vmatprep.subr.bf16.mxu1 %v1746_v14 }
 0x25a   :  { %616 = vmatpush1.bf16.msra.mxu0 %v1729_v8  ;;  %657 = vmatpush1.bf16.msra.mxu1 %v1750_v15 }
 0x25b   :  { %617 = vmatprep.subr.bf16.mxu0 %v1733_v9  ;;  %658 = vmatprep.subr.bf16.mxu1 %v1753_v16 }
 0x25e   :  { %618 = vmatpush1.bf16.msra.mxu0 %v1742_v12  ;;  %659 = vmatpush1.bf16.msra.mxu1 %v1762_v19 }
 0x25f   :  { %619 = vmatprep.subr.bf16.mxu0 %v1744_v13  ;;  %660 = vmatprep.subr.bf16.mxu1 %v1765_v20 }
 0x262   :  { %620 = vmatpush1.bf16.msra.mxu0 %v1756_v17  ;;  %661 = vmatpush1.bf16.msra.mxu1 %v1774_v23 }
 0x263   :  { %621 = vmatprep.subr.bf16.mxu0 %v1759_v18  ;;  %662 = vmatprep.subr.bf16.mxu1 %v1777_v24 }
 0x266   :  { %622 = vmatpush1.bf16.msra.mxu0 %v1768_v21  ;;  %663 = vmatpush1.bf16.msra.mxu1 %v1786_v27 }
 0x267   :  { %623 = vmatprep.subr.bf16.mxu0 %v1770_v22  ;;  %664 = vmatprep.subr.bf16.mxu1 %v1789_v28 }
 0x26a   :  { %624 = vmatpush1.bf16.msra.mxu0 %v1780_v25  ;;  %665 = vmatpush1.bf16.msra.mxu1 %v1796_v30 }
 0x26b   :  { %625 = vmatprep.subr.bf16.mxu0 %v1783_v26  ;;  %666 = vmatprep.subr.bf16.mxu1 %v1799_v31 }
 0x26e   :  { %626 = vmatpush1.bf16.msra.mxu0 %v1792_v29  ;;  %667 = vmatpush1.bf16.msra.mxu1 %v1803_v32 }
 0x26f   :  { %731 = vmatprep.subr.bf16.mxu0 %v1711_v1  ;;  %772 = vmatprep.subr.bf16.mxu1 %v1724_v6 }
 0x324   :  { %v525_v49 = vpop.f32.mrb[8].mxu0  ;;  %v566_v50 = vpop.f32.mrb[8].mxu1 }
 0x325   :  { %v573_v51 = vadd.f32 %v525_v49, %v487_v47  ;;  %v527_v53 = vpop.f32.mrb[9].mxu0  ;;  %v568_v54 = vpop.f32.mrb[9].mxu1  ;;  %v575_v36 = vadd.f32 %v566_v50, %v489_v33 }
 0x326   :  { %v574_v55 = vadd.f32 %v527_v53, %v488_v48  ;;  %v529_v56 = vpop.f32.mrb[10].mxu0  ;;  %v570_v57 = vpop.f32.mrb[10].mxu1  ;;  %v576_v63 = vadd.f32 %v568_v54, %v490_v62 }
 0x327   :  { %v1294_v58 = vmul.f32 -1.442695, %v573_v51  ;;  %v530_v59 = vpop.f32.mrb[11].mxu0  ;;  %v571_v60 = vpop.f32.mrb[11].mxu1 }
 0x328   :  { %v1295_v61 = vmul.f32 -1.442695, %v574_v55  ;;  %v1296_v34 = vmul.f32 -1.442695, %v576_v63 }
 0x329   :  { %1403 = vpow2.f32 %v1294_v58  ;;  %v606_v58 = vld [vmem:[#allocation4 + $0x38] sm:$0xff] }
 0x32a   :  { %1405 = vpow2.f32 %v1295_v61 }
 0x32b   :  { %1407 = vpow2.f32 %v1296_v34 }
 0x32c   :  { %1409 = vtanh.f32 %v575_v36 }
 0x333   :  { %v1404_v37 = vpop.eup %1403 }
 0x334   :  { %v1406_v38 = vpop.eup %1405  ;;  %v580_v39 = vadd.f32 1.0, %v1404_v37 }
 0x335   :  { %v586_v40 = vadd.f32 1.0, %v1406_v38  ;;  %v1408_v41 = vpop.eup %1407  ;;  %v610_v38 = vunpack.c.h.bf16 %v606_v58 }
 0x336   :  { %1411 = vrcp.f32 %v580_v39  ;;  %v1410_v43 = vpop.eup %1409  ;;  %v593_v35 = vadd.f32 1.0, %v1408_v41 }
 0x337   :  { %1413 = vrcp.f32 %v586_v40  ;;  %v609_v40 = vunpack.c.l.bf16 %v606_v58 }
 0x338   :  { %1415 = vrcp.f32 %v593_v35 }
 0x340   :  { %v1412_v44 = vpop.eup %1411 }
 0x341   :  { %v1414_v45 = vpop.eup %1413  ;;  %v597_v46 = vmul.f32 %v1412_v44, %v1410_v43 }
 0x342   :  { %v596_v47 = vmul.f32 %v1414_v45, %v1881_v42  ;;  %v1416_v49 = vpop.eup %1415  ;;  %v605_v42 = vld [vmem:[#allocation4 + $0x30] sm:$0xff] }
 0x343   :  { %v607_v53 = vunpack.c.l.bf16 %v605_v42  ;;  %v608_v54 = vunpack.c.h.bf16 %v605_v42 }
 0x344   :  { %v1919_v48 = vadd.f32 %v597_v46, %v596_v47 }
 0x346   :  { %1417 = vtanh.f32 %v1919_v48 }
 0x350   :  { %v1418_v50 = vpop.eup %1417 }
 0x351   :  { %v600_v51 = vmul.f32 %v1418_v50, %v1416_v49 }
 0x353   :  { %v601_v52 = vpack.c.bf16 %v600_v51, %v600_v51 }
 0x355   :  { %603 = vst [vmem:[#allocation9 + $0x8] sm:$0xf] %v601_v52  ;;  %644 = vmatmul.mubr.bf16.vlgmr.msra.gmra.mrb[12].mxu0 %v601_v52  ;;  %685 = vmatmul.mubr.bf16.vlgmr.msra.gmra.mrb[12].mxu1 %v601_v52 }
 0x356   :  { %732 = vmatpush1.bf16.msra.mxu0 %v1713_v2  ;;  %773 = vmatpush1.bf16.msra.mxu1 %v1726_v7 }
 0x357   :  { %733 = vmatprep.subr.bf16.mxu0 %v1716_v3  ;;  %774 = vmatprep.subr.bf16.mxu1 %v1736_v10 }
 0x358   :  { %763 = vmatprep.mubr.bf16.mxu0 %v1653_v0  ;;  %804 = vmatprep.mubr.bf16.mxu1 %v1653_v0 }
 0x35a   :  { %734 = vmatpush1.bf16.msra.mxu0 %v1719_v4  ;;  %775 = vmatpush1.bf16.msra.mxu1 %v1738_v11 }
 0x35b   :  { %735 = vmatprep.subr.bf16.mxu0 %v1722_v5  ;;  %776 = vmatprep.subr.bf16.mxu1 %v1746_v14 }
 0x35e   :  { %736 = vmatpush1.bf16.msra.mxu0 %v1729_v8  ;;  %777 = vmatpush1.bf16.msra.mxu1 %v1750_v15 }
 0x35f   :  { %737 = vmatprep.subr.bf16.mxu0 %v1733_v9  ;;  %778 = vmatprep.subr.bf16.mxu1 %v1753_v16 }
 0x362   :  { %738 = vmatpush1.bf16.msra.mxu0 %v1742_v12  ;;  %779 = vmatpush1.bf16.msra.mxu1 %v1762_v19 }
 0x363   :  { %739 = vmatprep.subr.bf16.mxu0 %v1744_v13  ;;  %780 = vmatprep.subr.bf16.mxu1 %v1765_v20 }
 0x366   :  { %740 = vmatpush1.bf16.msra.mxu0 %v1756_v17  ;;  %781 = vmatpush1.bf16.msra.mxu1 %v1774_v23 }
 0x367   :  { %741 = vmatprep.subr.bf16.mxu0 %v1759_v18  ;;  %782 = vmatprep.subr.bf16.mxu1 %v1777_v24 }
 0x36a   :  { %742 = vmatpush1.bf16.msra.mxu0 %v1768_v21  ;;  %783 = vmatpush1.bf16.msra.mxu1 %v1786_v27 }
 0x36b   :  { %743 = vmatprep.subr.bf16.mxu0 %v1770_v22  ;;  %784 = vmatprep.subr.bf16.mxu1 %v1789_v28 }
 0x36e   :  { %744 = vmatpush1.bf16.msra.mxu0 %v1780_v25  ;;  %785 = vmatpush1.bf16.msra.mxu1 %v1796_v30 }
 0x36f   :  { %745 = vmatprep.subr.bf16.mxu0 %v1783_v26  ;;  %786 = vmatprep.subr.bf16.mxu1 %v1799_v31 }
 0x372   :  { %746 = vmatpush1.bf16.msra.mxu0 %v1792_v29  ;;  %787 = vmatpush1.bf16.msra.mxu1 %v1803_v32 }
 0x373   :  { %851 = vmatprep.subr.bf16.mxu0 %v1711_v1  ;;  %892 = vmatprep.subr.bf16.mxu1 %v1724_v6 }
 0x428   :  { %v645_v55 = vpop.f32.mrb[12].mxu0  ;;  %v686_v56 = vpop.f32.mrb[12].mxu1 }
 0x429   :  { %v693_v57 = vadd.f32 %v645_v55, %v607_v53  ;;  %v647_v59 = vpop.f32.mrb[13].mxu0  ;;  %v688_v60 = vpop.f32.mrb[13].mxu1  ;;  %v695_v43 = vadd.f32 %v686_v56, %v609_v40 }
 0x42a   :  { %v694_v61 = vadd.f32 %v647_v59, %v608_v54  ;;  %v649_v62 = vpop.f32.mrb[14].mxu0  ;;  %v690_v63 = vpop.f32.mrb[14].mxu1  ;;  %v696_v39 = vadd.f32 %v688_v60, %v610_v38 }
 0x42b   :  { %v1297_v33 = vmul.f32 -1.442695, %v693_v57  ;;  %v650_v34 = vpop.f32.mrb[15].mxu0  ;;  %v691_v36 = vpop.f32.mrb[15].mxu1 }
 0x42c   :  { %v1298_v37 = vmul.f32 -1.442695, %v694_v61  ;;  %v1299_v41 = vmul.f32 -1.442695, %v696_v39 }
 0x42d   :  { %1419 = vpow2.f32 %v1297_v33  ;;  %v726_v33 = vld [vmem:[#allocation4 + $0x48] sm:$0xff] }
 0x42e   :  { %1421 = vpow2.f32 %v1298_v37 }
 0x42f   :  { %1423 = vpow2.f32 %v1299_v41 }
 0x430   :  { %1425 = vtanh.f32 %v695_v43 }
 0x437   :  { %v1420_v44 = vpop.eup %1419 }
 0x438   :  { %v1422_v45 = vpop.eup %1421  ;;  %v700_v46 = vadd.f32 1.0, %v1420_v44 }
 0x439   :  { %v706_v35 = vadd.f32 1.0, %v1422_v45  ;;  %v1424_v47 = vpop.eup %1423  ;;  %v730_v45 = vunpack.c.h.bf16 %v726_v33 }
 0x43a   :  { %1427 = vrcp.f32 %v700_v46  ;;  %v1426_v49 = vpop.eup %1425  ;;  %v713_v42 = vadd.f32 1.0, %v1424_v47 }
 0x43b   :  { %1429 = vrcp.f32 %v706_v35 }
 0x43c   :  { %1431 = vrcp.f32 %v713_v42 }
 0x444   :  { %v1428_v50 = vpop.eup %1427 }
 0x445   :  { %v1430_v51 = vpop.eup %1429  ;;  %v717_v52 = vmul.f32 %v1428_v50, %v1426_v49 }
 0x446   :  { %v716_v53 = vmul.f32 %v1430_v51, %v1919_v48  ;;  %v1432_v55 = vpop.eup %1431  ;;  %v725_v48 = vld [vmem:[#allocation4 + $0x40] sm:$0xff] }
 0x447   :  { %v727_v59 = vunpack.c.l.bf16 %v725_v48  ;;  %v728_v60 = vunpack.c.h.bf16 %v725_v48 }
 0x448   :  { %v1957_v54 = vadd.f32 %v717_v52, %v716_v53 }
 0x44a   :  { %1433 = vtanh.f32 %v1957_v54 }
 0x454   :  { %v1434_v56 = vpop.eup %1433 }
 0x455   :  { %v720_v57 = vmul.f32 %v1434_v56, %v1432_v55 }
 0x457   :  { %v721_v58 = vpack.c.bf16 %v720_v57, %v720_v57 }
 0x459   :  { %723 = vst [vmem:[#allocation9 + $0xc] sm:$0xf] %v721_v58  ;;  %764 = vmatmul.mubr.bf16.vlgmr.msra.gmra.mrb[16].mxu0 %v721_v58  ;;  %805 = vmatmul.mubr.bf16.vlgmr.msra.gmra.mrb[16].mxu1 %v721_v58 }
 0x45a   :  { %852 = vmatpush1.bf16.msra.mxu0 %v1713_v2  ;;  %893 = vmatpush1.bf16.msra.mxu1 %v1726_v7 }
 0x45b   :  { %853 = vmatprep.subr.bf16.mxu0 %v1716_v3  ;;  %894 = vmatprep.subr.bf16.mxu1 %v1736_v10 }
 0x45c   :  { %883 = vmatprep.mubr.bf16.mxu0 %v1653_v0  ;;  %924 = vmatprep.mubr.bf16.mxu1 %v1653_v0 }
 0x45e   :  { %854 = vmatpush1.bf16.msra.mxu0 %v1719_v4  ;;  %895 = vmatpush1.bf16.msra.mxu1 %v1738_v11 }
 0x45f   :  { %855 = vmatprep.subr.bf16.mxu0 %v1722_v5  ;;  %896 = vmatprep.subr.bf16.mxu1 %v1746_v14 }
 0x462   :  { %856 = vmatpush1.bf16.msra.mxu0 %v1729_v8  ;;  %897 = vmatpush1.bf16.msra.mxu1 %v1750_v15 }
 0x463   :  { %857 = vmatprep.subr.bf16.mxu0 %v1733_v9  ;;  %898 = vmatprep.subr.bf16.mxu1 %v1753_v16 }
 0x466   :  { %858 = vmatpush1.bf16.msra.mxu0 %v1742_v12  ;;  %899 = vmatpush1.bf16.msra.mxu1 %v1762_v19 }
 0x467   :  { %859 = vmatprep.subr.bf16.mxu0 %v1744_v13  ;;  %900 = vmatprep.subr.bf16.mxu1 %v1765_v20 }
 0x46a   :  { %860 = vmatpush1.bf16.msra.mxu0 %v1756_v17  ;;  %901 = vmatpush1.bf16.msra.mxu1 %v1774_v23 }
 0x46b   :  { %861 = vmatprep.subr.bf16.mxu0 %v1759_v18  ;;  %902 = vmatprep.subr.bf16.mxu1 %v1777_v24 }
 0x46e   :  { %862 = vmatpush1.bf16.msra.mxu0 %v1768_v21  ;;  %903 = vmatpush1.bf16.msra.mxu1 %v1786_v27 }
 0x46f   :  { %863 = vmatprep.subr.bf16.mxu0 %v1770_v22  ;;  %904 = vmatprep.subr.bf16.mxu1 %v1789_v28 }
 0x472   :  { %864 = vmatpush1.bf16.msra.mxu0 %v1780_v25  ;;  %905 = vmatpush1.bf16.msra.mxu1 %v1796_v30 }
 0x473   :  { %865 = vmatprep.subr.bf16.mxu0 %v1783_v26  ;;  %906 = vmatprep.subr.bf16.mxu1 %v1799_v31 }
 0x476   :  { %866 = vmatpush1.bf16.msra.mxu0 %v1792_v29  ;;  %907 = vmatpush1.bf16.msra.mxu1 %v1803_v32 }
 0x477   :  { %971 = vmatprep.subr.bf16.mxu0 %v1711_v1  ;;  %1012 = vmatprep.subr.bf16.mxu1 %v1724_v6  ;;  %v729_v6 = vunpack.c.l.bf16 %v726_v33 }
 0x52c   :  { %v765_v61 = vpop.f32.mrb[16].mxu0  ;;  %v806_v62 = vpop.f32.mrb[16].mxu1 }
 0x52d   :  { %v813_v63 = vadd.f32 %v765_v61, %v727_v59  ;;  %v767_v34 = vpop.f32.mrb[17].mxu0  ;;  %v808_v36 = vpop.f32.mrb[17].mxu1  ;;  %v815_v35 = vadd.f32 %v806_v62, %v729_v6  ;;  %v1506_v6 = vld [vmem:[#allocation7 + $0x28] ss:$16 sps:$4 sm:$0xff]  }
 0x52e   :  { %v814_v37 = vadd.f32 %v767_v34, %v728_v60  ;;  %v769_v38 = vpop.f32.mrb[18].mxu0  ;;  %v810_v39 = vpop.f32.mrb[18].mxu1  ;;  %v816_v1 = vadd.f32 %v808_v36, %v730_v45  ;;  %v1504_v45 = vld [vmem:[#allocation7 + $0x2c] ss:$16 sps:$4 sm:$0xff]  }
 0x52f   :  { %v1300_v40 = vmul.f32 -1.442695, %v813_v63  ;;  %v770_v41 = vpop.f32.mrb[19].mxu0  ;;  %v811_v43 = vpop.f32.mrb[19].mxu1 }
 0x530   :  { %v1301_v44 = vmul.f32 -1.442695, %v814_v37  ;;  %v1302_v46 = vmul.f32 -1.442695, %v816_v1  ;;  %v1501_v41 = vld [vmem:[#allocation7] ss:$16 sps:$4 sm:$0xff]  }
 0x531   :  { %1435 = vpow2.f32 %v1300_v40  ;;  %v1502_v43 = vld [vmem:[#allocation7 + $0x8] ss:$16 sps:$4 sm:$0xff]   ;;  %v1505_v1 = vld [vmem:[#allocation7 + $0x20] ss:$16 sps:$4 sm:$0xff]  }
 0x532   :  { %1437 = vpow2.f32 %v1301_v44  ;;  %v1503_v44 = vld [vmem:[#allocation7 + $0x24] ss:$16 sps:$4 sm:$0xff]  }
 0x533   :  { %1439 = vpow2.f32 %v1302_v46  ;;  %v1507_v46 = vld [vmem:[#allocation7 + $0x44] ss:$16 sps:$4 sm:$0xff]  }
 0x534   :  { %1441 = vtanh.f32 %v815_v35  ;;  %v1508_v35 = vld [vmem:[#allocation7 + $0x4c] ss:$16 sps:$4 sm:$0xff]  }
 0x53b   :  { %v1436_v47 = vpop.eup %1435 }
 0x53c   :  { %v1438_v49 = vpop.eup %1437  ;;  %v820_v50 = vadd.f32 1.0, %v1436_v47  ;;  %v1509_v47 = vld [vmem:[#allocation7 + $0x40] ss:$16 sps:$4 sm:$0xff]  }
 0x53d   :  { %v826_v51 = vadd.f32 1.0, %v1438_v49  ;;  %v1440_v52 = vpop.eup %1439  ;;  %v1510_v49 = vld [vmem:[#allocation7 + $0x48] ss:$16 sps:$4 sm:$0xff]  }
 0x53e   :  { %1443 = vrcp.f32 %v820_v50  ;;  %v1442_v42 = vpop.eup %1441  ;;  %v833_v57 = vadd.f32 1.0, %v1440_v52  ;;  %v1511_v50 = vld [vmem:[#allocation7 + $0x64] ss:$16 sps:$4 sm:$0xff]   ;;  %v1513_v52 = vld [vmem:[#allocation7 + $0x60] ss:$16 sps:$4 sm:$0xff]  }
 0x53f   :  { %1445 = vrcp.f32 %v826_v51  ;;  %v1512_v51 = vld [vmem:[#allocation7 + $0x6c] ss:$16 sps:$4 sm:$0xff]  }
 0x540   :  { %1447 = vrcp.f32 %v833_v57  ;;  %v1519_v57 = vld [vmem:[#allocation7 + $0xa4] ss:$16 sps:$4 sm:$0xff]  }
 0x548   :  { %v1444_v53 = vpop.eup %1443 }
 0x549   :  { %v1446_v55 = vpop.eup %1445  ;;  %v837_v56 = vmul.f32 %v1444_v53, %v1442_v42  ;;  %v1514_v42 = vld [vmem:[#allocation7 + $0x68] ss:$16 sps:$4 sm:$0xff]   ;;  %v1516_v53 = vld [vmem:[#allocation7 + $0x8c] ss:$16 sps:$4 sm:$0xff]  }
 0x54a   :  { %v836_v58 = vmul.f32 %v1446_v55, %v1957_v54  ;;  %v1448_v59 = vpop.eup %1447  ;;  %v1517_v55 = vld [vmem:[#allocation7 + $0x80] ss:$16 sps:$4 sm:$0xff]  }
 0x54c   :  { %v1995_v48 = vadd.f32 %v837_v56, %v836_v58  ;;  %v1518_v56 = vld [vmem:[#allocation7 + $0x88] ss:$16 sps:$4 sm:$0xff]   ;;  %v1520_v58 = vld [vmem:[#allocation7 + $0xac] ss:$16 sps:$4 sm:$0xff]  }
 0x54e   :  { %1449 = vtanh.f32 %v1995_v48 }
 0x558   :  { %v1450_v60 = vpop.eup %1449 }
 0x559   :  { %v840_v61 = vmul.f32 %v1450_v60, %v1448_v59  ;;  %v1522_v59 = vld [vmem:[#allocation7 + $0xa8] ss:$16 sps:$4 sm:$0xff]   ;;  %v1523_v60 = vld [vmem:[#allocation7 + $0xc4] ss:$16 sps:$4 sm:$0xff]  }
 0x55b   :  { %v841_v62 = vpack.c.bf16 %v840_v61, %v840_v61  ;;  %v1524_v61 = vld [vmem:[#allocation7 + $0xcc] ss:$16 sps:$4 sm:$0xff]  }
 0x55d   :  { %843 = vst [vmem:[#allocation9 + $0x10] sm:$0xf] %v841_v62  ;;  %884 = vmatmul.mubr.bf16.vlgmr.msra.gmra.mrb[20].mxu0 %v841_v62  ;;  %925 = vmatmul.mubr.bf16.vlgmr.msra.gmra.mrb[20].mxu1 %v841_v62  ;;  %v1525_v62 = vld [vmem:[#allocation7 + $0xc0] ss:$16 sps:$4 sm:$0xff]  }
 0x55e   :  { %972 = vmatpush1.bf16.msra.mxu0 %v1713_v2  ;;  %1013 = vmatpush1.bf16.msra.mxu1 %v1726_v7  ;;  %v1499_v2 = vld [vmem:[#allocation7 + $0x4] ss:$16 sps:$4 sm:$0xff]  }
 0x55f   :  { %973 = vmatprep.subr.bf16.mxu0 %v1716_v3  ;;  %1014 = vmatprep.subr.bf16.mxu1 %v1736_v10  ;;  %v1500_v3 = vld [vmem:[#allocation7 + $0xc] ss:$16 sps:$4 sm:$0xff]  }
 0x560   :  { %1003 = vmatprep.mubr.bf16.mxu0 %v1653_v0  ;;  %1044 = vmatprep.mubr.bf16.mxu1 %v1653_v0 }
 0x562   :  { %974 = vmatpush1.bf16.msra.mxu0 %v1719_v4  ;;  %1015 = vmatpush1.bf16.msra.mxu1 %v1738_v11  ;;  %v845_v4 = vld [vmem:[#allocation4 + $0x50] sm:$0xff]  ;;  %v846_v11 = vld [vmem:[#allocation4 + $0x58] sm:$0xff] }
 0x563   :  { %975 = vmatprep.subr.bf16.mxu0 %v1722_v5  ;;  %1016 = vmatprep.subr.bf16.mxu1 %v1746_v14  ;;  %v847_v5 = vunpack.c.l.bf16 %v845_v4  ;;  %v848_v7 = vunpack.c.h.bf16 %v845_v4  ;;  %v1528_v4 = vld [vmem:[#allocation7 + $0xec] ss:$16 sps:$4 sm:$0xff]  }
 0x566   :  { %976 = vmatpush1.bf16.msra.mxu0 %v1729_v8  ;;  %1017 = vmatpush1.bf16.msra.mxu1 %v1750_v15 }
 0x567   :  { %977 = vmatprep.subr.bf16.mxu0 %v1733_v9  ;;  %1018 = vmatprep.subr.bf16.mxu1 %v1753_v16 }
 0x56a   :  { %978 = vmatpush1.bf16.msra.mxu0 %v1742_v12  ;;  %1019 = vmatpush1.bf16.msra.mxu1 %v1762_v19 }
 0x56b   :  { %979 = vmatprep.subr.bf16.mxu0 %v1744_v13  ;;  %1020 = vmatprep.subr.bf16.mxu1 %v1765_v20 }
 0x56e   :  { %980 = vmatpush1.bf16.msra.mxu0 %v1756_v17  ;;  %1021 = vmatpush1.bf16.msra.mxu1 %v1774_v23  ;;  %v849_v23 = vunpack.c.l.bf16 %v846_v11 }
 0x56f   :  { %981 = vmatprep.subr.bf16.mxu0 %v1759_v18  ;;  %1022 = vmatprep.subr.bf16.mxu1 %v1777_v24 }
 0x572   :  { %982 = vmatpush1.bf16.msra.mxu0 %v1768_v21  ;;  %1023 = vmatpush1.bf16.msra.mxu1 %v1786_v27  ;;  %v850_v21 = vunpack.c.h.bf16 %v846_v11 }
 0x573   :  { %983 = vmatprep.subr.bf16.mxu0 %v1770_v22  ;;  %1024 = vmatprep.subr.bf16.mxu1 %v1789_v28 }
 0x576   :  { %984 = vmatpush1.bf16.msra.mxu0 %v1780_v25  ;;  %1025 = vmatpush1.bf16.msra.mxu1 %v1796_v30 }
 0x577   :  { %985 = vmatprep.subr.bf16.mxu0 %v1783_v26  ;;  %1026 = vmatprep.subr.bf16.mxu1 %v1799_v31 }
 0x57a   :  { %986 = vmatpush1.bf16.msra.mxu0 %v1792_v29  ;;  %1027 = vmatpush1.bf16.msra.mxu1 %v1803_v32 }
 0x57b   :  { %1091 = vmatprep.subr.bf16.mxu0 %v1499_v2  ;;  %1132 = vmatprep.subr.bf16.mxu1 %v1500_v3  ;;  %v1526_v2 = vld [vmem:[#allocation7 + $0xc8] ss:$16 sps:$4 sm:$0xff]   ;;  %v1527_v3 = vld [vmem:[#allocation7 + $0xe4] ss:$16 sps:$4 sm:$0xff]  }
 0x630   :  { %v885_v8 = vpop.f32.mrb[20].mxu0  ;;  %v926_v9 = vpop.f32.mrb[20].mxu1 }
 0x631   :  { %v933_v10 = vadd.f32 %v885_v8, %v847_v5  ;;  %v887_v12 = vpop.f32.mrb[21].mxu0  ;;  %v928_v13 = vpop.f32.mrb[21].mxu1  ;;  %v935_v25 = vadd.f32 %v926_v9, %v849_v23  ;;  %v1529_v5 = vld [vmem:[#allocation7 + $0xe0] ss:$16 sps:$4 sm:$0xff]  }
 0x632   :  { %v934_v14 = vadd.f32 %v887_v12, %v848_v7  ;;  %v889_v15 = vpop.f32.mrb[22].mxu0  ;;  %v930_v16 = vpop.f32.mrb[22].mxu1  ;;  %v936_v22 = vadd.f32 %v928_v13, %v850_v21  ;;  %v1530_v7 = vld [vmem:[#allocation7 + $0xe8] ss:$16 sps:$4 sm:$0xff]   ;;  %v965_v8 = vld [vmem:[#allocation4 + $0x60] sm:$0xff] }
 0x633   :  { %v1303_v17 = vmul.f32 -1.442695, %v933_v10  ;;  %v890_v18 = vpop.f32.mrb[23].mxu0  ;;  %v931_v19 = vpop.f32.mrb[23].mxu1  ;;  %v967_v9 = vunpack.c.l.bf16 %v965_v8  ;;  %v968_v10 = vunpack.c.h.bf16 %v965_v8 }
 0x634   :  { %v1304_v20 = vmul.f32 -1.442695, %v934_v14  ;;  %v1305_v24 = vmul.f32 -1.442695, %v936_v22  ;;  %v966_v14 = vld [vmem:[#allocation4 + $0x68] sm:$0xff] }
 0x635   :  { %1451 = vpow2.f32 %v1303_v17 }
 0x636   :  { %1453 = vpow2.f32 %v1304_v20 }
 0x637   :  { %1455 = vpow2.f32 %v1305_v24  ;;  %v970_v24 = vunpack.c.h.bf16 %v966_v14 }
 0x638   :  { %1457 = vtanh.f32 %v935_v25 }
 0x63f   :  { %v1452_v26 = vpop.eup %1451 }
 0x640   :  { %v1454_v27 = vpop.eup %1453  ;;  %v940_v28 = vadd.f32 1.0, %v1452_v26  ;;  %v969_v26 = vunpack.c.l.bf16 %v966_v14 }
 0x641   :  { %v946_v29 = vadd.f32 1.0, %v1454_v27  ;;  %v1456_v30 = vpop.eup %1455 }
 0x642   :  { %1459 = vrcp.f32 %v940_v28  ;;  %v1458_v31 = vpop.eup %1457  ;;  %v953_v33 = vadd.f32 1.0, %v1456_v30 }
 0x643   :  { %1461 = vrcp.f32 %v946_v29 }
 0x644   :  { %1463 = vrcp.f32 %v953_v33 }
 0x64c   :  { %v1460_v32 = vpop.eup %1459 }
 0x64d   :  { %v1462_v54 = vpop.eup %1461  ;;  %v957_v63 = vmul.f32 %v1460_v32, %v1458_v31 }
 0x64e   :  { %v956_v34 = vmul.f32 %v1462_v54, %v1995_v48  ;;  %v1464_v37 = vpop.eup %1463  ;;  %v1521_v48 = vld [vmem:[#allocation7 + $0xa0] ss:$16 sps:$4 sm:$0xff]  }
 0x650   :  { %v2031_v36 = vadd.f32 %v957_v63, %v956_v34 }
 0x652   :  { %1465 = vtanh.f32 %v2031_v36 }
 0x65c   :  { %v1466_v38 = vpop.eup %1465 }
 0x65d   :  { %v960_v39 = vmul.f32 %v1466_v38, %v1464_v37 }
 0x65f   :  { %v961_v40 = vpack.c.bf16 %v960_v39, %v960_v39 }
 0x661   :  { %963 = vst [vmem:[#allocation9 + $0x14] sm:$0xf] %v961_v40  ;;  %1004 = vmatmul.mubr.bf16.vlgmr.msra.gmra.mrb[24].mxu0 %v961_v40  ;;  %1045 = vmatmul.mubr.bf16.vlgmr.msra.gmra.mrb[24].mxu1 %v961_v40 }
 0x662   :  { %1092 = vmatpush1.bf16.msra.mxu0 %v1501_v41  ;;  %1133 = vmatpush1.bf16.msra.mxu1 %v1502_v43 }
 0x663   :  { %1093 = vmatprep.subr.bf16.mxu0 %v1503_v44  ;;  %1134 = vmatprep.subr.bf16.mxu1 %v1504_v45 }
 0x664   :  { %1123 = vmatprep.mubr.bf16.mxu0 %v1653_v0  ;;  %1164 = vmatprep.mubr.bf16.mxu1 %v1653_v0  ;;  %v1515_v0 = vld [vmem:[#allocation7 + $0x84] ss:$16 sps:$4 sm:$0xff]  }
 0x666   :  { %1094 = vmatpush1.bf16.msra.mxu0 %v1505_v1  ;;  %1135 = vmatpush1.bf16.msra.mxu1 %v1506_v6  ;;  %v1085_v1 = vld [vmem:[#allocation4 + $0x70] sm:$0xff] }
 0x667   :  { %1095 = vmatprep.subr.bf16.mxu0 %v1507_v46  ;;  %1136 = vmatprep.subr.bf16.mxu1 %v1508_v35  ;;  %v1087_v6 = vunpack.c.l.bf16 %v1085_v1  ;;  %v1088_v46 = vunpack.c.h.bf16 %v1085_v1 }
 0x66a   :  { %1096 = vmatpush1.bf16.msra.mxu0 %v1509_v47  ;;  %1137 = vmatpush1.bf16.msra.mxu1 %v1510_v49 }
 0x66b   :  { %1097 = vmatprep.subr.bf16.mxu0 %v1511_v50  ;;  %1138 = vmatprep.subr.bf16.mxu1 %v1512_v51  ;;  %v1086_v50 = vld [vmem:[#allocation4 + $0x78] sm:$0xff] }
 0x66e   :  { %1098 = vmatpush1.bf16.msra.mxu0 %v1513_v52  ;;  %1139 = vmatpush1.bf16.msra.mxu1 %v1514_v42 }
 0x66f   :  { %1099 = vmatprep.subr.bf16.mxu0 %v1515_v0  ;;  %1140 = vmatprep.subr.bf16.mxu1 %v1516_v53 }
 0x672   :  { %1100 = vmatpush1.bf16.msra.mxu0 %v1517_v55  ;;  %1141 = vmatpush1.bf16.msra.mxu1 %v1518_v56 }
 0x673   :  { %1101 = vmatprep.subr.bf16.mxu0 %v1519_v57  ;;  %1142 = vmatprep.subr.bf16.mxu1 %v1520_v58  ;;  %v1090_v58 = vunpack.c.h.bf16 %v1086_v50 }
 0x676   :  { %1102 = vmatpush1.bf16.msra.mxu0 %v1521_v48  ;;  %1143 = vmatpush1.bf16.msra.mxu1 %v1522_v59  ;;  %v1089_v59 = vunpack.c.l.bf16 %v1086_v50 }
 0x677   :  { %1103 = vmatprep.subr.bf16.mxu0 %v1523_v60  ;;  %1144 = vmatprep.subr.bf16.mxu1 %v1524_v61 }
 0x67a   :  { %1104 = vmatpush1.bf16.msra.mxu0 %v1525_v62  ;;  %1145 = vmatpush1.bf16.msra.mxu1 %v1526_v2 }
 0x67b   :  { %1105 = vmatprep.subr.bf16.mxu0 %v1527_v3  ;;  %1146 = vmatprep.subr.bf16.mxu1 %v1528_v4 }
 0x67e   :  { %1106 = vmatpush1.bf16.msra.mxu0 %v1529_v5  ;;  %1147 = vmatpush1.bf16.msra.mxu1 %v1530_v7 }
 0x734   :  { %v1005_v11 = vpop.f32.mrb[24].mxu0  ;;  %v1046_v12 = vpop.f32.mrb[24].mxu1 }
 0x735   :  { %v1053_v13 = vadd.f32 %v1005_v11, %v967_v9  ;;  %v1007_v15 = vpop.f32.mrb[25].mxu0  ;;  %v1048_v16 = vpop.f32.mrb[25].mxu1  ;;  %v1055_v28 = vadd.f32 %v1046_v12, %v969_v26 }
 0x736   :  { %v1054_v17 = vadd.f32 %v1007_v15, %v968_v10  ;;  %v1009_v18 = vpop.f32.mrb[26].mxu0  ;;  %v1050_v19 = vpop.f32.mrb[26].mxu1  ;;  %v1056_v25 = vadd.f32 %v1048_v16, %v970_v24 }
 0x737   :  { %v1306_v20 = vmul.f32 -1.442695, %v1053_v13  ;;  %v1010_v21 = vpop.f32.mrb[27].mxu0  ;;  %v1051_v22 = vpop.f32.mrb[27].mxu1 }
 0x738   :  { %v1307_v23 = vmul.f32 -1.442695, %v1054_v17  ;;  %v1308_v27 = vmul.f32 -1.442695, %v1056_v25 }
 0x739   :  { %1467 = vpow2.f32 %v1306_v20 }
 0x73a   :  { %1469 = vpow2.f32 %v1307_v23 }
 0x73b   :  { %1471 = vpow2.f32 %v1308_v27 }
 0x73c   :  { %1473 = vtanh.f32 %v1055_v28 }
 0x743   :  { %v1468_v29 = vpop.eup %1467 }
 0x744   :  { %v1470_v30 = vpop.eup %1469  ;;  %v1060_v31 = vadd.f32 1.0, %v1468_v29 }
 0x745   :  { %v1066_v32 = vadd.f32 1.0, %v1470_v30  ;;  %v1472_v54 = vpop.eup %1471 }
 0x746   :  { %1475 = vrcp.f32 %v1060_v31  ;;  %v1474_v63 = vpop.eup %1473  ;;  %v1073_v38 = vadd.f32 1.0, %v1472_v54 }
 0x747   :  { %1477 = vrcp.f32 %v1066_v32 }
 0x748   :  { %1479 = vrcp.f32 %v1073_v38 }
 0x750   :  { %v1476_v33 = vpop.eup %1475 }
 0x751   :  { %v1478_v34 = vpop.eup %1477  ;;  %v1077_v37 = vmul.f32 %v1476_v33, %v1474_v63 }
 0x752   :  { %v1076_v39 = vmul.f32 %v1478_v34, %v2031_v36  ;;  %v1480_v41 = vpop.eup %1479 }
 0x754   :  { %v1078_v40 = vadd.f32 %v1077_v37, %v1076_v39 }
 0x756   :  { %1481 = vtanh.f32 %v1078_v40 }
 0x760   :  { %v1482_v43 = vpop.eup %1481 }
 0x761   :  { %v1080_v44 = vmul.f32 %v1482_v43, %v1480_v41 }
 0x763   :  { %v1081_v45 = vpack.c.bf16 %v1080_v44, %v1080_v44 }
 0x765   :  { %1083 = vst [vmem:[#allocation9 + $0x18] sm:$0xf] %v1081_v45  ;;  %1124 = vmatmul.mubr.bf16.vlgmr.msra.gmra.mrb[28].mxu0 %v1081_v45  ;;  %1165 = vmatmul.mubr.bf16.vlgmr.msra.gmra.mrb[28].mxu1 %v1081_v45 }
 0x838   :  { %v1125_v35 = vpop.f32.mrb[28].mxu0  ;;  %v1166_v47 = vpop.f32.mrb[28].mxu1 }
 0x839   :  { %v1173_v49 = vadd.f32 %v1125_v35, %v1087_v6  ;;  %v1127_v51 = vpop.f32.mrb[29].mxu0  ;;  %v1168_v52 = vpop.f32.mrb[29].mxu1  ;;  %v1175_v61 = vadd.f32 %v1166_v47, %v1089_v59 }
 0x83a   :  { %v1174_v36 = vadd.f32 %v1127_v51, %v1088_v46  ;;  %v1129_v42 = vpop.f32.mrb[30].mxu0  ;;  %v1170_v0 = vpop.f32.mrb[30].mxu1  ;;  %v1176_v48 = vadd.f32 %v1168_v52, %v1090_v58 }
 0x83b   :  { %v1309_v53 = vmul.f32 -1.442695, %v1173_v49  ;;  %v1130_v55 = vpop.f32.mrb[31].mxu0  ;;  %v1171_v56 = vpop.f32.mrb[31].mxu1 }
 0x83c   :  { %v1310_v57 = vmul.f32 -1.442695, %v1174_v36  ;;  %v1311_v60 = vmul.f32 -1.442695, %v1176_v48 }
 0x83d   :  { %1483 = vpow2.f32 %v1309_v53 }
 0x83e   :  { %1485 = vpow2.f32 %v1310_v57 }
 0x83f   :  { %1487 = vpow2.f32 %v1311_v60 }
 0x840   :  { %1489 = vtanh.f32 %v1175_v61 }
 0x847   :  { %v1484_v62 = vpop.eup %1483 }
 0x848   :  { %v1486_v2 = vpop.eup %1485  ;;  %v1180_v3 = vadd.f32 1.0, %v1484_v62 }
 0x849   :  { %v1186_v4 = vadd.f32 1.0, %v1486_v2  ;;  %v1488_v5 = vpop.eup %1487 }
 0x84a   :  { %1491 = vrcp.f32 %v1180_v3  ;;  %v1490_v7 = vpop.eup %1489  ;;  %v1193_v11 = vadd.f32 1.0, %v1488_v5 }
 0x84b   :  { %1493 = vrcp.f32 %v1186_v4 }
 0x84c   :  { %1495 = vrcp.f32 %v1193_v11 }
 0x854   :  { %v1492_v8 = vpop.eup %1491 }
 0x855   :  { %v1494_v9 = vpop.eup %1493  ;;  %v1197_v10 = vmul.f32 %v1492_v8, %v1490_v7 }
 0x856   :  { %v1196_v12 = vmul.f32 %v1494_v9, %v1078_v40  ;;  %v1496_v14 = vpop.eup %1495 }
 0x858   :  { %v1198_v13 = vadd.f32 %v1197_v10, %v1196_v12 }
 0x85a   :  { %1497 = vtanh.f32 %v1198_v13  ;;  %1210 = vst [vmem:[#allocation12] sm:$0xff] %v1198_v13 }
 0x864   :  { %v1498_v15 = vpop.eup %1497 }
 0x865   :  { %v1200_v16 = vmul.f32 %v1498_v15, %v1496_v14 }
 0x867   :  { %v1201_v17 = vpack.c.bf16 %v1200_v16, %v1200_v16  ;;  %1209 = vst [vmem:[#allocation10] sm:$0xff] %v1200_v16 }
 0x868   :  { %1586 = shalt.err (!%p1583_p6)
}
 0x869   :  { %s1587_s22 = scalar_lea.hbm %s2090_s3, 128 }
 0x86a   :  { %p1588_p7 = scmp.ne.s32.totalorder %s2090_s3, %s1587_s22  ;;  %p1591_p8 = scmp.lt.u32.totalorder %s1587_s22, %s2090_s3 }
 0x86c   :  { %p1593_p9 = pnand %p1591_p8, %p1588_p7 }
 0x86e   :  { %1596 = shalt.err (!%p1593_p9)
}
 0x86f   :  { %1232 = dma.vmem_to_hbm [thread:$0]  %s1230_s14, 128, %s2090_s3, [#allocation11]   ;;  %1203 = vst [vmem:[#allocation9 + $0x1c] sm:$0xf] %v1201_v17 }
 0x870   :  { %s1597_s29 = scalar_lea.vmem %s2039_s18, 128  ;;  %p1602_p11 = scmp.lt.s32.totalorder %s2039_s18, %s2039_s18 }
 0x871   :  { %p1598_p10 = scmp.ne.s32.totalorder %s2039_s18, %s1597_s29  ;;  %p1603_p12 = scmp.lt.s32.totalorder %s1597_s29, %s1597_s29 }
 0x873   :  { %p1604_p13 = por %p1603_p12, %p1602_p11 }
 0x875   :  { %p1605_p0 = pnand %p1604_p13, %p1598_p10 }
 0x877   :  { %1608 = shalt.err (!%p1605_p0)
}
 0x878   :  { %s1609_s6 = scalar_lea.hbm %s2091_s4, 128 }
 0x879   :  { %p1610_p1 = scmp.ne.s32.totalorder %s2091_s4, %s1609_s6  ;;  %p1613_p2 = scmp.lt.u32.totalorder %s1609_s6, %s2091_s4 }
 0x87b   :  { %p1615_p3 = pnand %p1613_p2, %p1610_p1 }
 0x87d   :  { %1618 = shalt.err (!%p1615_p3)
}
 0x87e   :  { %1242 = dma.vmem_to_hbm [thread:$0]  %s2039_s18, 128, %s2091_s4, [#allocation11]  }
 0x87f   :  { %s1619_s12 = scalar_lea.vmem %s2037_s16, 512  ;;  %p1624_p5 = scmp.lt.s32.totalorder %s2037_s16, %s2037_s16 }
 0x880   :  { %p1620_p4 = scmp.ne.s32.totalorder %s2037_s16, %s1619_s12  ;;  %p1625_p6 = scmp.lt.s32.totalorder %s1619_s12, %s1619_s12 }
 0x882   :  { %p1626_p7 = por %p1625_p6, %p1624_p5 }
 0x884   :  { %p1627_p8 = pnand %p1626_p7, %p1620_p4 }
 0x886   :  { %1630 = shalt.err (!%p1627_p8)
}
 0x887   :  { %s1631_s1 = scalar_lea.hbm %s2089_s2, 512 }
 0x888   :  { %p1632_p9 = scmp.ne.s32.totalorder %s2089_s2, %s1631_s1  ;;  %p1635_p10 = scmp.lt.u32.totalorder %s1631_s1, %s2089_s2 }
 0x88a   :  { %p1637_p11 = pnand %p1635_p10, %p1632_p9 }
 0x88c   :  { %1640 = shalt.err (!%p1637_p11)
}
 0x88d   :  { %s1658_s4 = smov 64   ;;  %s1659_s18 = smov 4  }
 0x88e   :  { %1222 = dma.vmem_to_hbm [thread:$0]  %s2037_s16, 512, %s2089_s2, [#allocation6], %s1658_s4, %s1658_s4, %s1659_s18  }
 0x88f   :  { %1645 = dma.done.wait [#allocation6], 512  }
 0x890   :  { %1646 = vsyncadd [#allocation6], 4294966784 }
 0x891   :  { %1647 = dma.done.wait [#allocation11], 256  }
 0x892   :  { %1648 = vsyncadd [#allocation11], 4294967040 }
 0x893   :  { %1252 = vsyncpa [#allocation5], 1 }
 0x894   :  { %1253 = vsyncpa [#allocation8], 1 }
 0x895   :  { %1254 = vsyncpa [#allocation6], 1 }
 0x896   :  { %1255 = vsyncpa [#allocation11], 1 }

</bundles_post_ra>
